<compile_context>
chip_gen: v7x
topology: tpu7x:2x2x1
jax: 0.10.0
libtpu: 0.0.40
codegen_flags: <defaults>
</compile_context>

<pallas_src>
import jax
import jax.numpy as jnp
from jax.experimental import pallas as pl
from jax.experimental.pallas import tpu as pltpu


# ----------------------------------------------------------------------------
# Kernels
# ----------------------------------------------------------------------------
def _cca_kernel_flat(xr_ref, xi_ref, q1r_ref, q1i_ref, w2p_ref, scat_ref,
                     or_ref, oi_ref):
    """Lane-dense path (C < 128).  One grid step = one (TB, N*C) slab.

    xr/xi   : (TB, N*C) activations in their native dtype (f32 or bf16)
    q1r/q1i : (N*C, 2H) fused {1/N mean over sequence + fc_one} complex weights
    w2p     : (2H, 2C)  packed fc_last complex weights
    scat    : (C, N*C)  0/1 channel -> sequence broadcast matrix
    """
    xr = xr_ref[...]                       # no f32 upcast of the slabs
    xi = xi_ref[...]

    # mean over N + fc_one (complex): two MXU dots, f32 accumulation.
    h = (jnp.dot(xr, q1r_ref[...], preferred_element_type=jnp.float32)
         + jnp.dot(xi, q1i_ref[...], preferred_element_type=jnp.float32))
    h = jnp.tanh(h)                        # ComplexActivation('split')

    # fc_last (complex) as one packed block-real matmul: (TB, 2H) @ (2H, 2C).
    a = jnp.dot(h, w2p_ref[...].astype(h.dtype),
                preferred_element_type=jnp.float32)
    c = a.shape[-1] // 2
    att = jax.nn.sigmoid(jnp.sqrt(a[:, :c] ** 2 + a[:, c:] ** 2))   # (TB, C)

    # Broadcast the per-channel weights over the sequence, lane-dense.  The dot
    # emits directly in the activation dtype, so no (TB, N*C) f32 intermediate
    # exists for bf16 inputs, and the apply-multiplies stay in bf16 on v6e/v7x.
    att_full = jnp.dot(att.astype(xr.dtype), scat_ref[...],
                       preferred_element_type=xr.dtype)

    or_ref[...] = (xr * att_full).astype(or_ref.dtype)
    oi_ref[...] = (xi * att_full).astype(oi_ref.dtype)


def _cca_kernel_bcast(xr_ref, xi_ref, q1b_ref, w2p_ref, or_ref, oi_ref):
    """Direct-broadcast path (C is a multiple of 128).  One grid step = one
    (TB, N, C) slab; no O(N*C^2) scatter matrix is ever built."""
    xr = xr_ref[...]                       # (TB, N, C) native dtype
    xi = xi_ref[...]

    # Sequence sum with f32 accumulation; the 1/N is folded into q1b.
    sum_r = jnp.sum(xr, axis=1, dtype=jnp.float32)      # (TB, C)
    sum_i = jnp.sum(xi, axis=1, dtype=jnp.float32)
    s_cat = jnp.concatenate([sum_r, sum_i], axis=-1)    # (TB, 2C)

    h = jnp.tanh(jnp.dot(s_cat, q1b_ref[...].astype(s_cat.dtype),
                         preferred_element_type=jnp.float32))
    a = jnp.dot(h, w2p_ref[...].astype(h.dtype),
                preferred_element_type=jnp.float32)
    c = a.shape[-1] // 2
    att = jax.nn.sigmoid(jnp.sqrt(a[:, :c] ** 2 + a[:, c:] ** 2))   # (TB, C)

    att3 = att.astype(xr.dtype)[:, None, :]             # broadcast over sequence
    or_ref[...] = (xr * att3).astype(or_ref.dtype)
    oi_ref[...] = (xi * att3).astype(oi_ref.dtype)


# ----------------------------------------------------------------------------
# Tiling / VMEM helpers
# ----------------------------------------------------------------------------
def _round_up(x, m):
    return ((x + m - 1) // m) * m


def _pad8(x):
    return _round_up(max(int(x), 1), 8)


def _pad128(x):
    return _round_up(max(int(x), 1), 128)


def _vmem_capacity_bytes():
    """Generation-aware VMEM capacity (v5e/v6e 128 MiB, v7x 64 MiB)."""
    try:
        return int(pltpu.get_tpu_info().vmem_capacity_bytes)
    except Exception:
        return 64 * 1024 * 1024            # conservative (v7x floor)


def _pick_batch_tile(b, nc, act_itemsize, per_row_bytes, fixed_bytes, budget,
                     sub):
    """Smallest sublane-aligned batch tile whose activation slab is ~512 KiB
    (good DMA efficiency for this HBM-bound kernel), capped by the VMEM budget
    and forced to >= 2 grid steps (v7x megacore) whenever the batch spans more
    than one native row-group.  Returns (batch_tile, padded_batch)."""
    bp = _round_up(b, sub)                               # minimal aligned batch
    avail = max(budget - fixed_bytes, sub * per_row_bytes)
    cap = max(sub, (avail // max(per_row_bytes, 1)) // sub * sub)
    want = _round_up(max(1, (512 * 1024) // max(nc * act_itemsize, 1)), sub)
    tile = max(sub, min(cap, want, bp))
    if b > sub:
        # never hand the whole batch to a single grid step
        tile = min(tile, _round_up(-(-b // 2), sub))
        while tile > sub and _round_up(b, tile) // tile < 2:
            tile -= sub
    # prefer a tile that divides the aligned batch (avoids padded HBM traffic)
    for t in range(tile, sub - 1, -sub):
        if bp % t == 0 and 4 * t >= tile:
            tile = t
            break
    return tile, _round_up(b, tile)


# ----------------------------------------------------------------------------
# Wrapper
# ----------------------------------------------------------------------------
def complex_channel_attention(x_real, x_imag,
                              w1_real, w1_imag,    # (H, C) torch nn.Linear layout
                              w2_real, w2_imag,    # (C, H) torch nn.Linear layout
                              *, batch_tile=None, donate_inputs=False):
    b, n, c = x_real.shape
    h = w1_real.shape[0]
    nc = n * c
    f32 = jnp.float32
    act_dtype = x_real.dtype
    act_itemsize = act_dtype.itemsize
    sub = 8 if act_itemsize >= 4 else max(8, 32 // act_itemsize)
    # Weights follow the activation dtype for sub-32-bit activations (halves
    # constant DMA/VMEM); every matmul still accumulates in f32.
    w_dtype = act_dtype if act_itemsize < 4 else f32
    w_itemsize = jnp.dtype(w_dtype).itemsize

    # ---- glue: transpose / pack / fuse the torch-layout weights ------------
    w1r_t = jnp.asarray(w1_real, f32).T              # (C, H)
    w1i_t = jnp.asarray(w1_imag, f32).T
    w2r_t = jnp.asarray(w2_real, f32).T              # (H, C)
    w2i_t = jnp.asarray(w2_imag, f32).T
    inv_n = jnp.float32(1.0 / n)                     # exact mean: true N

    # Packed fc_last complex weights: (2H, 2C).
    w2p = jnp.concatenate(
        [jnp.concatenate([w2r_t, w2i_t], axis=1),
         jnp.concatenate([-w2i_t, w2r_t], axis=1)], axis=0).astype(w_dtype)

    use_bcast = (c % 128 == 0)

    # ---- VMEM accounting: activation double-buffers + lane-padded constants
    #      (x2 for worst-case double-buffering) + in-kernel temporaries -------
    per_row = 8 * nc * act_itemsize + 2 * nc * 4
    if use_bcast:
        fixed = 2 * (_pad8(2 * c) * _pad128(2 * h) * w_itemsize       # q1b
                     + _pad8(2 * h) * _pad128(2 * c) * w_itemsize)    # w2p
    else:
        fixed = 2 * (2 * nc * _pad128(2 * h) * w_itemsize             # q1r+q1i
                     + _pad8(2 * h) * _pad128(2 * c) * w_itemsize     # w2p
                     + _pad8(c) * nc * w_itemsize)                    # scat
    vmem_cap = _vmem_capacity_bytes()
    budget = int(vmem_cap * 0.45)
    if batch_tile is None:
        batch_tile, b_pad = _pick_batch_tile(b, nc, act_itemsize, per_row,
                                             fixed, budget, sub)
    else:
        b_pad = _round_up(b, batch_tile)
    est = fixed + batch_tile * per_row
    vmem_limit = int(min(vmem_cap * 0.9,
                         max(32 * 1024 * 1024, est + 8 * 1024 * 1024)))
    compiler_params = pltpu.CompilerParams(
        dimension_semantics=("parallel",), vmem_limit_bytes=vmem_limit)

    # Pad the batch to a whole number of tiles.  Padded rows are zeros: the
    # forward pass stays finite on them and they are sliced off below.
    if b_pad != b:
        pad = ((0, b_pad - b), (0, 0), (0, 0))
        x_real_p, x_imag_p = jnp.pad(x_real, pad), jnp.pad(x_imag, pad)
    else:
        x_real_p, x_imag_p = x_real, x_imag

    grid = (b_pad // batch_tile,)
    io_alias = {0: 0, 1: 1} if donate_inputs else {}

    def _const_spec(shape, single_buffer):
        idx = lambda i: (0,) * len(shape)            # fetched once, never re-DMA'd
        if single_buffer:
            return pl.BlockSpec(shape, idx, pipeline_mode=pl.Buffered(1))
        return pl.BlockSpec(shape, idx)

    if use_bcast:
        # ---- direct broadcast path (C multiple of 128): no scatter matrix ---
        q1b = (jnp.concatenate(
            [jnp.concatenate([w1r_t, w1i_t], axis=1),
             jnp.concatenate([-w1i_t, w1r_t], axis=1)], axis=0)
               * inv_n).astype(w_dtype)              # (2C, 2H), 1/N folded in
        x_spec = pl.BlockSpec((batch_tile, n, c), lambda i: (i, 0, 0))

        def _call(single_buffer):
            return pl.pallas_call(
                _cca_kernel_bcast,
                out_shape=(jax.ShapeDtypeStruct((b_pad, n, c), act_dtype),
                           jax.ShapeDtypeStruct((b_pad, n, c), act_dtype)),
                grid_spec=pltpu.PrefetchScalarGridSpec(
                    num_scalar_prefetch=0, grid=grid,
                    in_specs=[x_spec, x_spec,
                              _const_spec((2 * c, 2 * h), single_buffer),
                              _const_spec((2 * h, 2 * c), single_buffer)],
                    out_specs=[x_spec, x_spec]),
                compiler_params=compiler_params,
                input_output_aliases=io_alias)

        args = (x_real_p, x_imag_p, q1b, w2p)
        try:
            out_r, out_i = _call(True)(*args)
            jax.block_until_ready((out_r, out_i))
        except Exception:
            # pl.Buffered(1) not supported by this build: default pipeline
            # (VMEM budget already assumes double-buffered constants).
            out_r, out_i = _call(False)(*args)
        return out_r[:b], out_i[:b]

    # ---- lane-dense path (C < 128): 0/1 scatter-matmul broadcast ------------
    q1r = (jnp.tile(jnp.concatenate([w1r_t, w1i_t], axis=1), (n, 1))
           * inv_n).astype(w_dtype)                  # (N*C, 2H)
    q1i = (jnp.tile(jnp.concatenate([-w1i_t, w1r_t], axis=1), (n, 1))
           * inv_n).astype(w_dtype)
    scat = jnp.tile(jnp.eye(c, dtype=w_dtype), (1, n))     # (C, N*C)

    xr2 = x_real_p.reshape(b_pad, nc)
    xi2 = x_imag_p.reshape(b_pad, nc)
    x_spec = pl.BlockSpec((batch_tile, nc), lambda i: (i, 0))

    def _call(single_buffer):
        return pl.pallas_call(
            _cca_kernel_flat,
            out_shape=(jax.ShapeDtypeStruct((b_pad, nc), act_dtype),
                       jax.ShapeDtypeStruct((b_pad, nc), act_dtype)),
            grid_spec=pltpu.PrefetchScalarGridSpec(
                num_scalar_prefetch=0, grid=grid,
                in_specs=[x_spec, x_spec,
                          _const_spec((nc, 2 * h), single_buffer),
                          _const_spec((nc, 2 * h), single_buffer),
                          _const_spec((2 * h, 2 * c), single_buffer),
                          _const_spec((c, nc), single_buffer)],
                out_specs=[x_spec, x_spec]),
            compiler_params=compiler_params,
            input_output_aliases=io_alias)

    args = (xr2, xi2, q1r, q1i, w2p, scat)
    try:
        out_r2, out_i2 = _call(True)(*args)
        jax.block_until_ready((out_r2, out_i2))
    except Exception:
        out_r2, out_i2 = _call(False)(*args)
    return out_r2[:b].reshape(b, n, c), out_i2[:b].reshape(b, n, c)


# ----------------------------------------------------------------------------
# Pure-JAX reference (mirrors the PyTorch module)
# ----------------------------------------------------------------------------
def _reference(x_real, x_imag, w1r, w1i, w2r, w2i):
    avg_r = jnp.mean(x_real, axis=1)                 # (B, C)
    avg_i = jnp.mean(x_imag, axis=1)
    h_r = avg_r @ w1r.T - avg_i @ w1i.T
    h_i = avg_i @ w1r.T + avg_r @ w1i.T
    h_r, h_i = jnp.tanh(h_r), jnp.tanh(h_i)
    a_r = h_r @ w2r.T - h_i @ w2i.T
    a_i = h_i @ w2r.T + h_r @ w2i.T
    att = jax.nn.sigmoid(jnp.sqrt(a_r ** 2 + a_i ** 2))
    return x_real * att[:, None, :], x_imag * att[:, None, :]


if __name__ == "__main__":
    B, N, C = 16, 16, 32
    REDUCTION = 16
    H = C // REDUCTION  # 2

    key = jax.random.PRNGKey(0)
    k = jax.random.split(key, 6)
    x_real = jax.random.normal(k[0], (B, N, C), dtype=jnp.float32)
    x_imag = jax.random.normal(k[1], (B, N, C), dtype=jnp.float32)
    # Deterministic synthetic weights (torch nn.Linear layout: (out, in)).
    w1_real = jax.random.normal(k[2], (H, C), dtype=jnp.float32) * 0.2
    w1_imag = jax.random.normal(k[3], (H, C), dtype=jnp.float32) * 0.2
    w2_real = jax.random.normal(k[4], (C, H), dtype=jnp.float32) * 0.2
    w2_imag = jax.random.normal(k[5], (C, H), dtype=jnp.float32) * 0.2

    # f32 path (lane-dense scatter path, 2 parallel grid steps at this shape).
    out_real, out_imag = complex_channel_attention(
        x_real, x_imag, w1_real, w1_imag, w2_real, w2_imag)
    jax.block_until_ready((out_real, out_imag))
    ref_real, ref_imag = _reference(
        x_real, x_imag, w1_real, w1_imag, w2_real, w2_imag)
    assert jnp.allclose(out_real, ref_real, atol=1e-4, rtol=1e-4)
    assert jnp.allclose(out_imag, ref_imag, atol=1e-4, rtol=1e-4)

    # bf16 activations: native bf16 MXU path, bf16 weights, f32 accumulation.
    out_r16, out_i16 = complex_channel_attention(
        x_real.astype(jnp.bfloat16), x_imag.astype(jnp.bfloat16),
        w1_real, w1_imag, w2_real, w2_imag)
    jax.block_until_ready((out_r16, out_i16))
    assert out_r16.dtype == jnp.bfloat16 and out_i16.dtype == jnp.bfloat16
    assert jnp.allclose(out_r16.astype(jnp.float32), ref_real, atol=1e-1, rtol=1e-1)
    assert jnp.allclose(out_i16.astype(jnp.float32), ref_imag, atol=1e-1, rtol=1e-1)

    # Lane-width channels (C multiple of 128) exercise the direct-broadcast
    # path: no O(N*C^2) scatter matrix is built.
    B2, N2, C2 = 16, 8, 128
    H2 = C2 // REDUCTION  # 8
    k2 = jax.random.split(jax.random.PRNGKey(1), 6)
    xr = jax.random.normal(k2[0], (B2, N2, C2), dtype=jnp.float32)
    xi = jax.random.normal(k2[1], (B2, N2, C2), dtype=jnp.float32)
    w1r = jax.random.normal(k2[2], (H2, C2), dtype=jnp.float32) * 0.1
    w1i = jax.random.normal(k2[3], (H2, C2), dtype=jnp.float32) * 0.1
    w2r = jax.random.normal(k2[4], (C2, H2), dtype=jnp.float32) * 0.1
    w2i = jax.random.normal(k2[5], (C2, H2), dtype=jnp.float32) * 0.1
    o_r, o_i = complex_channel_attention(xr, xi, w1r, w1i, w2r, w2i)
    jax.block_until_ready((o_r, o_i))
    r_r, r_i = _reference(xr, xi, w1r, w1i, w2r, w2i)
    assert jnp.allclose(o_r, r_r, atol=1e-4, rtol=1e-4)
    assert jnp.allclose(o_i, r_i, atol=1e-4, rtol=1e-4)

    print("KERNEL_OK")
</pallas_src>

<mosaic_0001>
module attributes {stable_mosaic.version = 11 : i64} {
  func.func @_cca_kernel_flat(%arg0: i32, %arg1: memref<8x512xf32, #tpu.memory_space<vmem>>, %arg2: memref<8x512xf32, #tpu.memory_space<vmem>>, %arg3: memref<512x4xf32, #tpu.memory_space<vmem>>, %arg4: memref<512x4xf32, #tpu.memory_space<vmem>>, %arg5: memref<4x64xf32, #tpu.memory_space<vmem>>, %arg6: memref<32x512xf32, #tpu.memory_space<vmem>>, %arg7: memref<8x512xf32, #tpu.memory_space<vmem>>, %arg8: memref<8x512xf32, #tpu.memory_space<vmem>>) attributes {dimension_semantics = [#tpu.dimension_semantics<parallel>], iteration_bounds = array<i64: 2>, scalar_prefetch = 0 : i64, scratch_operands = 0 : i64, tpu.core_type = #tpu.core_type<tc>, window_params = [{transform_indices = @transform_0, window_bounds = array<i64: 8, 512>}, {transform_indices = @transform_1, window_bounds = array<i64: 8, 512>}, {pipeline_mode = #tpu.pipeline_mode<synchronous>, transform_indices = @transform_2, window_bounds = array<i64: 512, 4>}, {pipeline_mode = #tpu.pipeline_mode<synchronous>, transform_indices = @transform_3, window_bounds = array<i64: 512, 4>}, {pipeline_mode = #tpu.pipeline_mode<synchronous>, transform_indices = @transform_4, window_bounds = array<i64: 4, 64>}, {pipeline_mode = #tpu.pipeline_mode<synchronous>, transform_indices = @transform_5, window_bounds = array<i64: 32, 512>}, {transform_indices = @transform_6, window_bounds = array<i64: 8, 512>}, {transform_indices = @transform_7, window_bounds = array<i64: 8, 512>}]} {
    %c0 = arith.constant 0 : index
    %c0_0 = arith.constant 0 : index
    %0 = vector.load %arg1[%c0, %c0_0] : memref<8x512xf32, #tpu.memory_space<vmem>>, vector<8x512xf32>
    %c0_1 = arith.constant 0 : index
    %c0_2 = arith.constant 0 : index
    %1 = vector.load %arg2[%c0_1, %c0_2] : memref<8x512xf32, #tpu.memory_space<vmem>>, vector<8x512xf32>
    %c0_3 = arith.constant 0 : index
    %c0_4 = arith.constant 0 : index
    %2 = vector.load %arg3[%c0_3, %c0_4] : memref<512x4xf32, #tpu.memory_space<vmem>>, vector<512x4xf32>
    %cst = arith.constant dense<0.000000e+00> : vector<8x4xf32>
    %3 = tpu.matmul %0, %2, %cst {dimension_numbers = #tpu.dot_dimension_numbers<[1], [0], [0], [1], [0, 0, 1, 1], [], []>} : vector<8x512xf32>, vector<512x4xf32>, vector<8x4xf32> -> vector<8x4xf32>
    %c0_5 = arith.constant 0 : index
    %c0_6 = arith.constant 0 : index
    %4 = vector.load %arg4[%c0_5, %c0_6] : memref<512x4xf32, #tpu.memory_space<vmem>>, vector<512x4xf32>
    %cst_7 = arith.constant dense<0.000000e+00> : vector<8x4xf32>
    %5 = tpu.matmul %1, %4, %cst_7 {dimension_numbers = #tpu.dot_dimension_numbers<[1], [0], [0], [1], [0, 0, 1, 1], [], []>} : vector<8x512xf32>, vector<512x4xf32>, vector<8x4xf32> -> vector<8x4xf32>
    %6 = arith.addf %3, %5 : vector<8x4xf32>
    %7 = math.tanh %6 : vector<8x4xf32>
    %c0_8 = arith.constant 0 : index
    %c0_9 = arith.constant 0 : index
    %8 = vector.load %arg5[%c0_8, %c0_9] : memref<4x64xf32, #tpu.memory_space<vmem>>, vector<4x64xf32>
    %cst_10 = arith.constant dense<0.000000e+00> : vector<8x64xf32>
    %9 = tpu.matmul %7, %8, %cst_10 {dimension_numbers = #tpu.dot_dimension_numbers<[1], [0], [0], [1], [0, 0, 1, 1], [], []>} : vector<8x4xf32>, vector<4x64xf32>, vector<8x64xf32> -> vector<8x64xf32>
    %10 = vector.extract_strided_slice %9 {offsets = [0, 0], sizes = [8, 32], strides = [1, 1]} : vector<8x64xf32> to vector<8x32xf32>
    %11 = arith.mulf %10, %10 : vector<8x32xf32>
    %12 = vector.extract_strided_slice %9 {offsets = [0, 32], sizes = [8, 32], strides = [1, 1]} : vector<8x64xf32> to vector<8x32xf32>
    %13 = arith.mulf %12, %12 : vector<8x32xf32>
    %14 = arith.addf %11, %13 : vector<8x32xf32>
    %15 = math.sqrt %14 : vector<8x32xf32>
    %16 = arith.negf %15 : vector<8x32xf32>
    %17 = math.exp %16 : vector<8x32xf32>
    %cst_11 = arith.constant 1.000000e+00 : f32
    %18 = vector.broadcast %cst_11 : f32 to vector<8x32xf32>
    %19 = arith.addf %18, %17 : vector<8x32xf32>
    %20 = arith.divf %18, %19 : vector<8x32xf32>
    %c0_12 = arith.constant 0 : index
    %c0_13 = arith.constant 0 : index
    %21 = vector.load %arg6[%c0_12, %c0_13] : memref<32x512xf32, #tpu.memory_space<vmem>>, vector<32x512xf32>
    %cst_14 = arith.constant dense<0.000000e+00> : vector<8x512xf32>
    %22 = tpu.matmul %20, %21, %cst_14 {dimension_numbers = #tpu.dot_dimension_numbers<[1], [0], [0], [1], [0, 0, 1, 1], [], []>} : vector<8x32xf32>, vector<32x512xf32>, vector<8x512xf32> -> vector<8x512xf32>
    %23 = arith.mulf %0, %22 : vector<8x512xf32>
    %c0_15 = arith.constant 0 : index
    %c0_16 = arith.constant 0 : index
    %24 = vector.load %arg7[%c0_15, %c0_16] : memref<8x512xf32, #tpu.memory_space<vmem>>, vector<8x512xf32>
    tpu.vector_store %arg7[%c0_15, %c0_16], %23 {strides = array<i32>} : memref<8x512xf32, #tpu.memory_space<vmem>>, vector<8x512xf32>,
    %25 = arith.mulf %1, %22 : vector<8x512xf32>
    %c0_17 = arith.constant 0 : index
    %c0_18 = arith.constant 0 : index
    %26 = vector.load %arg8[%c0_17, %c0_18] : memref<8x512xf32, #tpu.memory_space<vmem>>, vector<8x512xf32>
    tpu.vector_store %arg8[%c0_17, %c0_18], %25 {strides = array<i32>} : memref<8x512xf32, #tpu.memory_space<vmem>>, vector<8x512xf32>,
    return
  }
  func.func @transform_0(%arg0: i32) -> (i32, i32) {
    %c0_i32 = arith.constant 0 : i32
    %c0_i32_0 = arith.constant 0 : i32
    return %arg0, %c0_i32 : i32, i32
  }
  func.func @transform_1(%arg0: i32) -> (i32, i32) {
    %c0_i32 = arith.constant 0 : i32
    %c0_i32_0 = arith.constant 0 : i32
    return %arg0, %c0_i32 : i32, i32
  }
  func.func @transform_2(%arg0: i32) -> (i32, i32) {
    %c0_i32 = arith.constant 0 : i32
    %c0_i32_0 = arith.constant 0 : i32
    %c0_i32_1 = arith.constant 0 : i32
    return %c0_i32, %c0_i32_0 : i32, i32
  }
  func.func @transform_3(%arg0: i32) -> (i32, i32) {
    %c0_i32 = arith.constant 0 : i32
    %c0_i32_0 = arith.constant 0 : i32
    %c0_i32_1 = arith.constant 0 : i32
    return %c0_i32, %c0_i32_0 : i32, i32
  }
  func.func @transform_4(%arg0: i32) -> (i32, i32) {
    %c0_i32 = arith.constant 0 : i32
    %c0_i32_0 = arith.constant 0 : i32
    %c0_i32_1 = arith.constant 0 : i32
    return %c0_i32, %c0_i32_0 : i32, i32
  }
  func.func @transform_5(%arg0: i32) -> (i32, i32) {
    %c0_i32 = arith.constant 0 : i32
    %c0_i32_0 = arith.constant 0 : i32
    %c0_i32_1 = arith.constant 0 : i32
    return %c0_i32, %c0_i32_0 : i32, i32
  }
  func.func @transform_6(%arg0: i32) -> (i32, i32) {
    %c0_i32 = arith.constant 0 : i32
    %c0_i32_0 = arith.constant 0 : i32
    return %arg0, %c0_i32 : i32, i32
  }
  func.func @transform_7(%arg0: i32) -> (i32, i32) {
    %c0_i32 = arith.constant 0 : i32
    %c0_i32_0 = arith.constant 0 : i32
    return %arg0, %c0_i32 : i32, i32
  }
}

module attributes {stable_mosaic.version = 11 : i64} {
  func.func @_cca_kernel_flat(%arg0: i32, %arg1: memref<8x512xf32, #tpu.memory_space<vmem>>, %arg2: memref<8x512xf32, #tpu.memory_space<vmem>>, %arg3: memref<512x4xf32, #tpu.memory_space<vmem>>, %arg4: memref<512x4xf32, #tpu.memory_space<vmem>>, %arg5: memref<4x64xf32, #tpu.memory_space<vmem>>, %arg6: memref<32x512xf32, #tpu.memory_space<vmem>>, %arg7: memref<8x512xf32, #tpu.memory_space<vmem>>, %arg8: memref<8x512xf32, #tpu.memory_space<vmem>>) attributes {dimension_semantics = [#tpu.dimension_semantics<parallel>], iteration_bounds = array<i64: 2>, scalar_prefetch = 0 : i64, scratch_operands = 0 : i64, tpu.core_type = #tpu.core_type<tc>, window_params = [{transform_indices = @transform_0, window_bounds = array<i64: 8, 512>}, {transform_indices = @transform_1, window_bounds = array<i64: 8, 512>}, {pipeline_mode = #tpu.pipeline_mode<synchronous>, transform_indices = @transform_2, window_bounds = array<i64: 512, 4>}, {pipeline_mode = #tpu.pipeline_mode<synchronous>, transform_indices = @transform_3, window_bounds = array<i64: 512, 4>}, {pipeline_mode = #tpu.pipeline_mode<synchronous>, transform_indices = @transform_4, window_bounds = array<i64: 4, 64>}, {pipeline_mode = #tpu.pipeline_mode<synchronous>, transform_indices = @transform_5, window_bounds = array<i64: 32, 512>}, {transform_indices = @transform_6, window_bounds = array<i64: 8, 512>}, {transform_indices = @transform_7, window_bounds = array<i64: 8, 512>}]} {
    %c0 = arith.constant 0 : index
    %c0_0 = arith.constant 0 : index
    %0 = vector.load %arg1[%c0, %c0_0] : memref<8x512xf32, #tpu.memory_space<vmem>>, vector<8x512xf32>
    %c0_1 = arith.constant 0 : index
    %c0_2 = arith.constant 0 : index
    %1 = vector.load %arg2[%c0_1, %c0_2] : memref<8x512xf32, #tpu.memory_space<vmem>>, vector<8x512xf32>
    %c0_3 = arith.constant 0 : index
    %c0_4 = arith.constant 0 : index
    %2 = vector.load %arg3[%c0_3, %c0_4] : memref<512x4xf32, #tpu.memory_space<vmem>>, vector<512x4xf32>
    %cst = arith.constant dense<0.000000e+00> : vector<8x4xf32>
    %3 = tpu.matmul %0, %2, %cst {dimension_numbers = #tpu.dot_dimension_numbers<[1], [0], [0], [1], [0, 0, 1, 1], [], []>} : vector<8x512xf32>, vector<512x4xf32>, vector<8x4xf32> -> vector<8x4xf32>
    %c0_5 = arith.constant 0 : index
    %c0_6 = arith.constant 0 : index
    %4 = vector.load %arg4[%c0_5, %c0_6] : memref<512x4xf32, #tpu.memory_space<vmem>>, vector<512x4xf32>
    %cst_7 = arith.constant dense<0.000000e+00> : vector<8x4xf32>
    %5 = tpu.matmul %1, %4, %cst_7 {dimension_numbers = #tpu.dot_dimension_numbers<[1], [0], [0], [1], [0, 0, 1, 1], [], []>} : vector<8x512xf32>, vector<512x4xf32>, vector<8x4xf32> -> vector<8x4xf32>
    %6 = arith.addf %3, %5 : vector<8x4xf32>
    %7 = math.tanh %6 : vector<8x4xf32>
    %c0_8 = arith.constant 0 : index
    %c0_9 = arith.constant 0 : index
    %8 = vector.load %arg5[%c0_8, %c0_9] : memref<4x64xf32, #tpu.memory_space<vmem>>, vector<4x64xf32>
    %cst_10 = arith.constant dense<0.000000e+00> : vector<8x64xf32>
    %9 = tpu.matmul %7, %8, %cst_10 {dimension_numbers = #tpu.dot_dimension_numbers<[1], [0], [0], [1], [0, 0, 1, 1], [], []>} : vector<8x4xf32>, vector<4x64xf32>, vector<8x64xf32> -> vector<8x64xf32>
    %10 = vector.extract_strided_slice %9 {offsets = [0, 0], sizes = [8, 32], strides = [1, 1]} : vector<8x64xf32> to vector<8x32xf32>
    %11 = arith.mulf %10, %10 : vector<8x32xf32>
    %12 = vector.extract_strided_slice %9 {offsets = [0, 32], sizes = [8, 32], strides = [1, 1]} : vector<8x64xf32> to vector<8x32xf32>
    %13 = arith.mulf %12, %12 : vector<8x32xf32>
    %14 = arith.addf %11, %13 : vector<8x32xf32>
    %15 = math.sqrt %14 : vector<8x32xf32>
    %16 = arith.negf %15 : vector<8x32xf32>
    %17 = math.exp %16 : vector<8x32xf32>
    %cst_11 = arith.constant 1.000000e+00 : f32
    %18 = vector.broadcast %cst_11 : f32 to vector<8x32xf32>
    %19 = arith.addf %18, %17 : vector<8x32xf32>
    %20 = arith.divf %18, %19 : vector<8x32xf32>
    %c0_12 = arith.constant 0 : index
    %c0_13 = arith.constant 0 : index
    %21 = vector.load %arg6[%c0_12, %c0_13] : memref<32x512xf32, #tpu.memory_space<vmem>>, vector<32x512xf32>
    %cst_14 = arith.constant dense<0.000000e+00> : vector<8x512xf32>
    %22 = tpu.matmul %20, %21, %cst_14 {dimension_numbers = #tpu.dot_dimension_numbers<[1], [0], [0], [1], [0, 0, 1, 1], [], []>} : vector<8x32xf32>, vector<32x512xf32>, vector<8x512xf32> -> vector<8x512xf32>
    %23 = arith.mulf %0, %22 : vector<8x512xf32>
    %c0_15 = arith.constant 0 : index
    %c0_16 = arith.constant 0 : index
    %24 = vector.load %arg7[%c0_15, %c0_16] : memref<8x512xf32, #tpu.memory_space<vmem>>, vector<8x512xf32>
    tpu.vector_store %arg7[%c0_15, %c0_16], %23 {strides = array<i32>} : memref<8x512xf32, #tpu.memory_space<vmem>>, vector<8x512xf32>,
    %25 = arith.mulf %1, %22 : vector<8x512xf32>
    %c0_17 = arith.constant 0 : index
    %c0_18 = arith.constant 0 : index
    %26 = vector.load %arg8[%c0_17, %c0_18] : memref<8x512xf32, #tpu.memory_space<vmem>>, vector<8x512xf32>
    tpu.vector_store %arg8[%c0_17, %c0_18], %25 {strides = array<i32>} : memref<8x512xf32, #tpu.memory_space<vmem>>, vector<8x512xf32>,
    return
  }
  func.func @transform_0(%arg0: i32) -> (i32, i32) {
    %c0_i32 = arith.constant 0 : i32
    %c0_i32_0 = arith.constant 0 : i32
    return %arg0, %c0_i32 : i32, i32
  }
  func.func @transform_1(%arg0: i32) -> (i32, i32) {
    %c0_i32 = arith.constant 0 : i32
    %c0_i32_0 = arith.constant 0 : i32
    return %arg0, %c0_i32 : i32, i32
  }
  func.func @transform_2(%arg0: i32) -> (i32, i32) {
    %c0_i32 = arith.constant 0 : i32
    %c0_i32_0 = arith.constant 0 : i32
    %c0_i32_1 = arith.constant 0 : i32
    return %c0_i32, %c0_i32_0 : i32, i32
  }
  func.func @transform_3(%arg0: i32) -> (i32, i32) {
    %c0_i32 = arith.constant 0 : i32
    %c0_i32_0 = arith.constant 0 : i32
    %c0_i32_1 = arith.constant 0 : i32
    return %c0_i32, %c0_i32_0 : i32, i32
  }
  func.func @transform_4(%arg0: i32) -> (i32, i32) {
    %c0_i32 = arith.constant 0 : i32
    %c0_i32_0 = arith.constant 0 : i32
    %c0_i32_1 = arith.constant 0 : i32
    return %c0_i32, %c0_i32_0 : i32, i32
  }
  func.func @transform_5(%arg0: i32) -> (i32, i32) {
    %c0_i32 = arith.constant 0 : i32
    %c0_i32_0 = arith.constant 0 : i32
    %c0_i32_1 = arith.constant 0 : i32
    return %c0_i32, %c0_i32_0 : i32, i32
  }
  func.func @transform_6(%arg0: i32) -> (i32, i32) {
    %c0_i32 = arith.constant 0 : i32
    %c0_i32_0 = arith.constant 0 : i32
    return %arg0, %c0_i32 : i32, i32
  }
  func.func @transform_7(%arg0: i32) -> (i32, i32) {
    %c0_i32 = arith.constant 0 : i32
    %c0_i32_0 = arith.constant 0 : i32
    return %arg0, %c0_i32 : i32, i32
  }
}

</mosaic_0001>

<bundles_post_ra>
// kernel: tpu_custom_call.1
= control target key start
LH: loop header
LB: loop body
LE: loop exit
PB: predicated region body
PF: predicated region fallthrough
CT: control target
= control target key end

     0   :  { %13 = vsyncpa [#allocation3], 0  ;;  %s2276_s0 = inlined_call_operand.vmem [shape: f32[16,512], index: 0, kind: input, shape index: {}]   ;;  %s2277_s1 = inlined_call_operand.vmem [shape: f32[16,512], index: 1, kind: input, shape index: {}]   ;;  %s2278_s2 = inlined_call_operand.vmem [shape: f32[512,4], index: 2, kind: input, shape index: {}]   ;;  %s2279_s3 = inlined_call_operand.vmem [shape: f32[512,4], index: 3, kind: input, shape index: {}]   ;;  %s2280_s4 = inlined_call_operand.vmem [shape: f32[4,64], index: 4, kind: input, shape index: {}]   ;;  %s2281_s5 = inlined_call_operand.vmem [shape: f32[32,512], index: 5, kind: input, shape index: {}]   ;;  %s2282_s6 = inlined_call_operand.hbm [shape: f32[16,512], index: 6, kind: output, shape index: {0}]   ;;  %s2283_s7 = inlined_call_operand.hbm [shape: f32[16,512], index: 7, kind: output, shape index: {1}]  }
   0x1   :  { %15 = vsyncpa [#allocation3 + $0x1], 0 }
   0x2   :  { %16 = vsyncpa [#allocation5], 0 }
   0x3   :  { %18 = vsyncpa [#allocation5 + $0x1], 0  ;;  %s1652_s24 = smov 0   ;;  %s1654_s25 = smov 0  }
   0x4   :  { %s1656_s26 = smov 0   ;;  %s1658_s27 = smov 0  }
   0x5 LB: > { %s1673_s28 = sadd.s32 4294967295, %s1605_s27   ;;  %s1138_s29 = sadd.s32 4294967294, %s1605_s27   ;;  %s1605_s27 = sphi %s1658_s27, %s2289_s27   ;;  %s1601_s26 = sphi %s1656_s26, %s2288_s26   ;;  %s1597_s25 = sphi %s1654_s25, %s2287_s25   ;;  %s1593_s24 = sphi %s1652_s24, %s2286_s24  }
   0x6   : > { %s1677_s30 = sadd.s32 1, %s1605_s27   ;;  %s167_s8 = sadd.s32 1, %s1601_s26 }
   0x7   : > { %s164_s9 = ssub.s32 %s1605_s27, %s1677_s30  ;;  %p177_p0 = scmp.ne.s32.totalorder %s1601_s26, %s1597_s25 }
   0x8   : > { %p165_p1 = scmp.eq.s32.totalorder %s164_s9, 0  ;;  %p178_p2 = scmp.eq.s32.totalorder %s1673_s28, 1 }
   0x9   : > { %p183_p3 = scmp.ne.s32.totalorder %s1597_s25, %s1593_s24  ;;  %p184_p4 = scmp.eq.s32.totalorder %s1138_s29, 1 }
   0xa   : > { %s1688_s10 = scalar_select %p165_p1, %s1601_s26, %s167_s8  }
   0xb   : > { %p1690_p5 = por %p178_p2, %p177_p0  ;;  %p1694_p6 = por %p184_p4, %p183_p3 }
   0xc   : > { %p1141_p7 = scmp.ge.s32.totalorder %s1605_s27, 1  ;;  %p256_p8 = scmp.lt.s32.totalorder %s1605_s27, 3 }
   0xe   : > { %p257_p9 = pnand %p1141_p7, %p256_p8 }
   0xf   : > { %v396_v0 = vld [vmem:[%s2279_s3 + $0x80] sm:$0xff] (!%p257_p9)  ;;  %v397_v1 = vld [vmem:[%s2279_s3 + $0x88] sm:$0xff] (!%p257_p9)  ;;  %v398_v11 = vld [vmem:[%s2279_s3 + $0x90] sm:$0xff] (!%p257_p9)  ;;  %p298_p10 = scmp.lt.s32.totalorder (!%p257_p9), %s1673_s28, 1  ;;  %vm730_vm0 = vcmask (!%p257_p9), 1043456   ;;  %vm1608_vm1 = vmmov (!%p257_p9), 0  }
  0x10   : > { %260 = sbr.rel (%p257_p9) target bundleno = 939 (0x3ab), region = 44  ;;  %v428_v2 = vld [vmem:[%s2279_s3 + $0x180] sm:$0xff] (!%p257_p9)  ;;  %v1312_v3 = vpack.c.bf16 (!%p257_p9), %v397_v1, %v396_v0  ;;  %v429_v4 = vld [vmem:[%s2279_s3 + $0x188] sm:$0xff] (!%p257_p9)  ;;  %v399_v13 = vld [vmem:[%s2279_s3 + $0x98] sm:$0xff] (!%p257_p9)  ;;  %vm726_vm2 = vcmask (!%p257_p9), 31744   ;;  %vm839_vm5 = vcmask (!%p257_p9), 261120  }
  0x11   : > { %v380_v5 = vld [vmem:[%s2279_s3] sm:$0xff] (!%p257_p9)  ;;  %v381_v6 = vld [vmem:[%s2279_s3 + $0x8] sm:$0xff] (!%p257_p9)  ;;  %v1344_v7 = vpack.c.bf16 (!%p257_p9), %v429_v4, %v428_v2  ;;  %v430_v14 = vld [vmem:[%s2279_s3 + $0x190] sm:$0xff] (!%p257_p9)  ;;  %v1316_v16 = vpack.c.bf16 (!%p257_p9), %v399_v13, %v398_v11  ;;  %s2189_s17 = sand.u32 (!%p257_p9), 1, %s1597_s25   ;;  %s1163_s18 = sshll.u32 (!%p257_p9), %s1673_s28, 9 }
  0x12   : > { %v1314_v8 = vpack.c.bf16 (!%p257_p9), %v381_v6, %v380_v5  ;;  %v412_v9 = vld [vmem:[%s2279_s3 + $0x100] sm:$0xff] (!%p257_p9)  ;;  %v413_v10 = vld [vmem:[%s2279_s3 + $0x108] sm:$0xff] (!%p257_p9)  ;;  %1313 = vmatprep.subr.bf16.mxu0 (!%p257_p9), %v1312_v3  ;;  %v431_v15 = vld [vmem:[%s2279_s3 + $0x198] sm:$0xff] (!%p257_p9)  ;;  %s2211_s14 = scalar_lea.hbm (!%p257_p9), %s2283_s7, %s1163_s18  ;;  %s1002_s16 = scalar_lea.sflag (!%p257_p9), [#allocation3], %s2189_s17 }
  0x13   : > { %v1346_v12 = vpack.c.bf16 (!%p257_p9), %v413_v10, %v412_v9  ;;  %1345 = vmatprep.subr.bf16.mxu1 (!%p257_p9), %v1344_v7  ;;  %v1348_v17 = vpack.c.bf16 (!%p257_p9), %v431_v15, %v430_v14  ;;  %v382_v18 = vld [vmem:[%s2279_s3 + $0x10] sm:$0xff] (!%p257_p9)  ;;  %v383_v19 = vld [vmem:[%s2279_s3 + $0x18] sm:$0xff] (!%p257_p9)  ;;  %v400_v23 = vld [vmem:[%s2279_s3 + $0xa0] sm:$0xff] (!%p257_p9) }
  0x14   : > { %1315 = vmatpush3.bf16.msra.mxu0 (!%p257_p9), %v1314_v8  ;;  %v414_v20 = vld [vmem:[%s2279_s3 + $0x110] sm:$0xff] (!%p257_p9)  ;;  %v1318_v21 = vpack.c.bf16 (!%p257_p9), %v383_v19, %v382_v18  ;;  %v415_v22 = vld [vmem:[%s2279_s3 + $0x118] sm:$0xff] (!%p257_p9)  ;;  %v401_v24 = vld [vmem:[%s2279_s3 + $0xa8] sm:$0xff] (!%p257_p9) }
  0x15   : > { %1347 = vmatpush3.bf16.msra.mxu1 (!%p257_p9), %v1346_v12  ;;  %1317 = vmatprep.subr.bf16.mxu0 (!%p257_p9), %v1316_v16  ;;  %v1350_v25 = vpack.c.bf16 (!%p257_p9), %v415_v22, %v414_v20  ;;  %v1320_v26 = vpack.c.bf16 (!%p257_p9), %v401_v24, %v400_v23  ;;  %v432_v27 = vld [vmem:[%s2279_s3 + $0x1a0] sm:$0xff] (!%p257_p9)  ;;  %v433_v28 = vld [vmem:[%s2279_s3 + $0x1a8] sm:$0xff] (!%p257_p9)  ;;  %v402_v35 = vld [vmem:[%s2279_s3 + $0xb0] sm:$0xff] (!%p257_p9) }
  0x16   : > { %1349 = vmatprep.subr.bf16.mxu1 (!%p257_p9), %v1348_v17  ;;  %v384_v29 = vld [vmem:[%s2279_s3 + $0x20] sm:$0xff] (!%p257_p9)  ;;  %v1352_v30 = vpack.c.bf16 (!%p257_p9), %v433_v28, %v432_v27  ;;  %v385_v31 = vld [vmem:[%s2279_s3 + $0x28] sm:$0xff] (!%p257_p9)  ;;  %v403_v36 = vld [vmem:[%s2279_s3 + $0xb8] sm:$0xff] (!%p257_p9) }
  0x17   : > { %v416_v32 = vld [vmem:[%s2279_s3 + $0x120] sm:$0xff]  ;;  %v417_v33 = vld [vmem:[%s2279_s3 + $0x128] sm:$0xff]  ;;  %v1322_v34 = vpack.c.bf16 %v385_v31, %v384_v29  ;;  %v434_v37 = vld [vmem:[%s2279_s3 + $0x1b0] sm:$0xff]  ;;  %v1324_v39 = vpack.c.bf16 %v403_v36, %v402_v35  ;;  %s1812_s15 = scalar_select %p298_p10, %s1673_s28, 1 }
  0x18   : > { %1319 = vmatpush3.bf16.msra.mxu0 %v1318_v21  ;;  %v1354_v38 = vpack.c.bf16 %v417_v33, %v416_v32  ;;  %v435_v40 = vld [vmem:[%s2279_s3 + $0x1b8] sm:$0xff]  ;;  %v386_v41 = vld [vmem:[%s2279_s3 + $0x30] sm:$0xff]  ;;  %v404_v46 = vld [vmem:[%s2279_s3 + $0xc0] sm:$0xff]  ;;  %s2200_s28 = scalar_lea.hbm %s2282_s6, %s1163_s18 }
  0x19   : > { %1351 = vmatpush3.bf16.msra.mxu1 %v1350_v25  ;;  %1321 = vmatprep.subr.bf16.mxu0 %v1320_v26  ;;  %v387_v42 = vld [vmem:[%s2279_s3 + $0x38] sm:$0xff]  ;;  %v1356_v43 = vpack.c.bf16 %v435_v40, %v434_v37  ;;  %v418_v44 = vld [vmem:[%s2279_s3 + $0x130] sm:$0xff]  ;;  %v405_v47 = vld [vmem:[%s2279_s3 + $0xc8] sm:$0xff]  ;;  %s1161_s19 = sshll.u32 %s1812_s15, 5 }
  0x1a   : > { %1353 = vmatprep.subr.bf16.mxu1 %v1352_v30  ;;  %v419_v45 = vld [vmem:[%s2279_s3 + $0x138] sm:$0xff]  ;;  %v436_v48 = vld [vmem:[%s2279_s3 + $0x1c0] sm:$0xff]  ;;  %v437_v49 = vld [vmem:[%s2279_s3 + $0x1c8] sm:$0xff]  ;;  %v1326_v50 = vpack.c.bf16 %v387_v42, %v386_v41  ;;  %v1328_v52 = vpack.c.bf16 %v405_v47, %v404_v46  ;;  %s1862_s22 = scalar_lea.vmem %s2277_s1, %s1161_s19  ;;  %s2020_s29 = scalar_lea.vmem %s2276_s0, %s1161_s19 }
  0x1b   : > { %v1358_v51 = vpack.c.bf16 %v419_v45, %v418_v44  ;;  %v388_v53 = vld [vmem:[%s2279_s3 + $0x40] sm:$0xff]  ;;  %v389_v54 = vld [vmem:[%s2279_s3 + $0x48] sm:$0xff]  ;;  %v1360_v56 = vpack.c.bf16 %v437_v49, %v436_v48  ;;  %v406_v58 = vld [vmem:[%s2279_s3 + $0xd0] sm:$0xff]  ;;  %s1142_s19 = sshll.u32 %s2189_s17, 5 }
  0x1c   : > { %1323 = vmatpush3.bf16.msra.mxu0 %v1322_v34  ;;  %v420_v55 = vld [vmem:[%s2279_s3 + $0x140] sm:$0xff]  ;;  %v421_v57 = vld [vmem:[%s2279_s3 + $0x148] sm:$0xff]  ;;  %v407_v59 = vld [vmem:[%s2279_s3 + $0xd8] sm:$0xff]  ;;  %v1330_v62 = vpack.c.bf16 %v389_v54, %v388_v53  ;;  %s290_s20 = scalar_lea.vmem [#allocation2], %s1142_s19  ;;  %s297_s23 = scalar_lea.vmem [#allocation4], %s1142_s19 }
  0x1d   : > { %1355 = vmatpush3.bf16.msra.mxu1 %v1354_v38  ;;  %1325 = vmatprep.subr.bf16.mxu0 %v1324_v39  ;;  %v438_v60 = vld [vmem:[%s2279_s3 + $0x1d0] sm:$0xff]  ;;  %v439_v61 = vld [vmem:[%s2279_s3 + $0x1d8] sm:$0xff]  ;;  %v1362_v63 = vpack.c.bf16 %v421_v57, %v420_v55  ;;  %v1332_v0 = vpack.c.bf16 %v407_v59, %v406_v58  ;;  %v408_v6 = vld [vmem:[%s2279_s3 + $0xe0] sm:$0xff]  ;;  %s1021_s21 = sshll.u32 %s290_s20, 4  ;;  %s1035_s8 = sshll.u32 %s297_s23, 4  ;;  %s2206_s21 = int_to_ptr.vmem [resolvable:$true] %s1021_s21  ;;  %s2213_s8 = int_to_ptr.vmem [resolvable:$true] %s1035_s8 }
  0x1e   : > { %1357 = vmatprep.subr.bf16.mxu1 %v1356_v43  ;;  %v390_v1 = vld [vmem:[%s2279_s3 + $0x50] sm:$0xff]  ;;  %v391_v2 = vld [vmem:[%s2279_s3 + $0x58] sm:$0xff]  ;;  %v1364_v4 = vpack.c.bf16 %v439_v61, %v438_v60  ;;  %v409_v7 = vld [vmem:[%s2279_s3 + $0xe8] sm:$0xff]  ;;  %s1511_s15 = scalar_lea.vmem %s2206_s21, 512  ;;  %s1610_s19 = smov [#allocation2]  }
  0x1f   : > { %v422_v3 = vld [vmem:[%s2279_s3 + $0x150] sm:$0xff]  ;;  %v423_v5 = vld [vmem:[%s2279_s3 + $0x158] sm:$0xff]  ;;  %v440_v8 = vld [vmem:[%s2279_s3 + $0x1e0] sm:$0xff]  ;;  %v1334_v10 = vpack.c.bf16 %v391_v2, %v390_v1  ;;  %v1336_v14 = vpack.c.bf16 %v409_v7, %v408_v6  ;;  %p1512_p11 = scmp.ne.s32.totalorder %s2206_s21, %s1511_s15 }
  0x20   : > { %1327 = vmatpush3.bf16.msra.mxu0 %v1326_v50  ;;  %v441_v9 = vld [vmem:[%s2279_s3 + $0x1e8] sm:$0xff]  ;;  %v392_v11 = vld [vmem:[%s2279_s3 + $0x60] sm:$0xff]  ;;  %v1366_v13 = vpack.c.bf16 %v423_v5, %v422_v3  ;;  %v1883_v17 = vld [vmem:[%s1862_s22 + $0x18] sm:$0xff] }
  0x21   : > { %1359 = vmatpush3.bf16.msra.mxu1 %v1358_v51  ;;  %1329 = vmatprep.subr.bf16.mxu0 %v1328_v52  ;;  %v393_v12 = vld [vmem:[%s2279_s3 + $0x68] sm:$0xff]  ;;  %v424_v15 = vld [vmem:[%s2279_s3 + $0x160] sm:$0xff]  ;;  %v1368_v18 = vpack.c.bf16 %v441_v9, %v440_v8  ;;  %v410_v20 = vld [vmem:[%s2279_s3 + $0xf0] sm:$0xff]  ;;  %p1513_p12 = pnand %p1512_p11, %p1690_p5 }
  0x22   : > { %1361 = vmatprep.subr.bf16.mxu1 %v1360_v56  ;;  %v1880_v16 = vld [vmem:[%s1862_s22 + $0x8] sm:$0xff]  ;;  %v411_v21 = vld [vmem:[%s2279_s3 + $0xf8] sm:$0xff]  ;;  %v442_v22 = vld [vmem:[%s2279_s3 + $0x1f0] sm:$0xff]  ;;  %578 = vmatprep.mubr.f32.mxu1 %v1883_v17  ;;  %v1338_v24 = vpack.c.bf16 %v393_v12, %v392_v11 }
  0x23   : > { %v425_v19 = vld [vmem:[%s2279_s3 + $0x168] sm:$0xff]  ;;  %508 = vmatprep.mubr.f32.mxu0 %v1880_v16  ;;  %v443_v23 = vld [vmem:[%s2279_s3 + $0x1f8] sm:$0xff]  ;;  %v1340_v26 = vpack.c.bf16 %v411_v21, %v410_v20  ;;  %v394_v27 = vld [vmem:[%s2279_s3 + $0x70] sm:$0xff]  ;;  %p1514_p13 = pneg %p1513_p12 }
  0x24   : > { %1331 = vmatpush3.bf16.msra.mxu0 %v1330_v62  ;;  %v1370_v25 = vpack.c.bf16 %v425_v19, %v424_v15  ;;  %v395_v28 = vld [vmem:[%s2279_s3 + $0x78] sm:$0xff]  ;;  %v426_v29 = vld [vmem:[%s2279_s3 + $0x170] sm:$0xff]  ;;  %v1372_v30 = vpack.c.bf16 %v443_v23, %v442_v22  ;;  %v332_v32 = vld [vmem:[%s2278_s2 + $0x80] sm:$0xff] }
  0x25   : > { %1363 = vmatpush3.bf16.msra.mxu1 %v1362_v63  ;;  %1333 = vmatprep.subr.bf16.mxu0 %v1332_v0  ;;  %v427_v31 = vld [vmem:[%s2279_s3 + $0x178] sm:$0xff]  ;;  %v333_v33 = vld [vmem:[%s2278_s2 + $0x88] sm:$0xff]  ;;  %v364_v34 = vld [vmem:[%s2278_s2 + $0x180] sm:$0xff]  ;;  %v1342_v36 = vpack.c.bf16 %v395_v28, %v394_v27 }
  0x26   : > { %1365 = vmatprep.subr.bf16.mxu1 %v1364_v4  ;;  %v365_v35 = vld [vmem:[%s2278_s2 + $0x188] sm:$0xff]  ;;  %v1374_v37 = vpack.c.bf16 %v427_v31, %v426_v29  ;;  %v1376_v38 = vpack.c.bf16 %v333_v33, %v332_v32  ;;  %v316_v39 = vld [vmem:[%s2278_s2] sm:$0xff]  ;;  %v334_v44 = vld [vmem:[%s2278_s2 + $0x90] sm:$0xff] }
  0x27   : > { %v317_v40 = vld [vmem:[%s2278_s2 + $0x8] sm:$0xff]  ;;  %v348_v41 = vld [vmem:[%s2278_s2 + $0x100] sm:$0xff]  ;;  %v1408_v42 = vpack.c.bf16 %v365_v35, %v364_v34  ;;  %v335_v45 = vld [vmem:[%s2278_s2 + $0x98] sm:$0xff] }
  0x28   : > { %1335 = vmatpush3.bf16.msra.mxu0 %v1334_v10  ;;  %v349_v43 = vld [vmem:[%s2278_s2 + $0x108] sm:$0xff]  ;;  %v366_v46 = vld [vmem:[%s2278_s2 + $0x190] sm:$0xff]  ;;  %v367_v47 = vld [vmem:[%s2278_s2 + $0x198] sm:$0xff]  ;;  %v1378_v50 = vpack.c.bf16 %v317_v40, %v316_v39  ;;  %v1380_v52 = vpack.c.bf16 %v335_v45, %v334_v44 }
  0x29   : > { %1367 = vmatpush3.bf16.msra.mxu1 %v1366_v13  ;;  %1337 = vmatprep.subr.bf16.mxu0 %v1336_v14  ;;  %v1951_v48 = vld [vmem:[%s1862_s22] sm:$0xff]  ;;  %v1954_v49 = vld [vmem:[%s1862_s22 + $0x10] sm:$0xff]  ;;  %v1410_v51 = vpack.c.bf16 %v349_v43, %v348_v41  ;;  %v319_v54 = vld [vmem:[%s2278_s2 + $0x18] sm:$0xff]  ;;  %v1412_v56 = vpack.c.bf16 %v367_v47, %v366_v46  ;;  %s1515_s22 = sshll.u32 %s1610_s19, 4  ;;  %s1516_s22 = int_to_ptr.vmem [resolvable:$false] %s1515_s22 }
  0x2a   : > { %1369 = vmatprep.subr.bf16.mxu1 %v1368_v18  ;;  %v318_v53 = vld [vmem:[%s2278_s2 + $0x10] sm:$0xff]  ;;  %v351_v57 = vld [vmem:[%s2278_s2 + $0x118] sm:$0xff]  ;;  %v336_v58 = vld [vmem:[%s2278_s2 + $0xa0] sm:$0xff]  ;;  %s1517_s9 = scalar_lea.vmem %s1516_s22, 1024  ;;  %p1518_p0 = scmp.lt.s32.totalorder %s2206_s21, %s1516_s22 }
  0x2b   : > { %v350_v55 = vld [vmem:[%s2278_s2 + $0x110] sm:$0xff]  ;;  %v337_v59 = vld [vmem:[%s2278_s2 + $0xa8] sm:$0xff]  ;;  %v368_v60 = vld [vmem:[%s2278_s2 + $0x1a0] sm:$0xff]  ;;  %v1382_v62 = vpack.c.bf16 %v319_v54, %v318_v53  ;;  %p1519_p1 = scmp.lt.s32.totalorder %s1517_s9, %s1511_s15 }
  0x2c   : > { %1339 = vmatpush3.bf16.msra.mxu0 %v1338_v24  ;;  %v369_v61 = vld [vmem:[%s2278_s2 + $0x1a8] sm:$0xff]  ;;  %v1414_v63 = vpack.c.bf16 %v351_v57, %v350_v55  ;;  %v1384_v0 = vpack.c.bf16 %v337_v59, %v336_v58  ;;  %v320_v1 = vld [vmem:[%s2278_s2 + $0x20] sm:$0xff]  ;;  %v338_v6 = vld [vmem:[%s2278_s2 + $0xb0] sm:$0xff] }
  0x2d   : > { %1371 = vmatpush3.bf16.msra.mxu1 %v1370_v25  ;;  %1341 = vmatprep.subr.bf16.mxu0 %v1340_v26  ;;  %v321_v2 = vld [vmem:[%s2278_s2 + $0x28] sm:$0xff]  ;;  %v352_v3 = vld [vmem:[%s2278_s2 + $0x120] sm:$0xff]  ;;  %v1416_v4 = vpack.c.bf16 %v369_v61, %v368_v60  ;;  %v339_v7 = vld [vmem:[%s2278_s2 + $0xb8] sm:$0xff]  ;;  %p1520_p2 = por %p1519_p1, %p1518_p0 }
  0x2e   : > { %1373 = vmatprep.subr.bf16.mxu1 %v1372_v30  ;;  %v353_v5 = vld [vmem:[%s2278_s2 + $0x128] sm:$0xff]  ;;  %v370_v8 = vld [vmem:[%s2278_s2 + $0x1b0] sm:$0xff]  ;;  %v371_v9 = vld [vmem:[%s2278_s2 + $0x1b8] sm:$0xff]  ;;  %v1386_v10 = vpack.c.bf16 %v321_v2, %v320_v1  ;;  %v1388_v12 = vpack.c.bf16 %v339_v7, %v338_v6 }
  0x2f   : > { %v1418_v11 = vpack.c.bf16 %v353_v5, %v352_v3  ;;  %v322_v13 = vld [vmem:[%s2278_s2 + $0x30] sm:$0xff]  ;;  %v323_v14 = vld [vmem:[%s2278_s2 + $0x38] sm:$0xff]  ;;  %v1420_v18 = vpack.c.bf16 %v371_v9, %v370_v8  ;;  %v340_v20 = vld [vmem:[%s2278_s2 + $0xc0] sm:$0xff]  ;;  %p1521_p3 = pnand %p1520_p2, %p1514_p13 }
  0x30   : > { %1343 = vmatpush3.bf16.msra.mxu0 %v1342_v36  ;;  %v354_v15 = vld [vmem:[%s2278_s2 + $0x130] sm:$0xff]  ;;  %v355_v19 = vld [vmem:[%s2278_s2 + $0x138] sm:$0xff]  ;;  %v341_v21 = vld [vmem:[%s2278_s2 + $0xc8] sm:$0xff]  ;;  %v1390_v24 = vpack.c.bf16 %v323_v14, %v322_v13  ;;  %v1607_v13 = vmov 0.0  }
  0x31   : > { %1375 = vmatpush3.bf16.msra.mxu1 %v1374_v37  ;;  %1377 = vmatprep.subr.bf16.mxu0 %v1376_v38  ;;  %v372_v22 = vld [vmem:[%s2278_s2 + $0x1c0] sm:$0xff]  ;;  %v373_v23 = vld [vmem:[%s2278_s2 + $0x1c8] sm:$0xff]  ;;  %v2041_v26 = vld [vmem:[%s2020_s29 + $0x18] sm:$0xff]  ;;  %v1422_v27 = vpack.c.bf16 %v355_v19, %v354_v15  ;;  %v1392_v28 = vpack.c.bf16 %v341_v21, %v340_v20 }
  0x32   : > { %1409 = vmatprep.subr.bf16.mxu1 %v1408_v42  ;;  %v2038_v25 = vld [vmem:[%s2020_s29 + $0x8] sm:$0xff]  ;;  %v324_v29 = vld [vmem:[%s2278_s2 + $0x40] sm:$0xff]  ;;  %v1424_v32 = vpack.c.bf16 %v373_v23, %v372_v22  ;;  %v342_v34 = vld [vmem:[%s2278_s2 + $0xd0] sm:$0xff] }
  0x33   : > { %509 = vmatmul.mubr.f32.vlgmr.msra.gmra.mrb[0].mxu0 %v1951_v48  ;;  %v325_v30 = vld [vmem:[%s2278_s2 + $0x48] sm:$0xff]  ;;  %v356_v31 = vld [vmem:[%s2278_s2 + $0x140] sm:$0xff]  ;;  %v343_v35 = vld [vmem:[%s2278_s2 + $0xd8] sm:$0xff] }
  0x34   : > { %579 = vmatmul.mubr.f32.vlgmr.msra.gmra.mrb[0].mxu1 %v1954_v49  ;;  %1379 = vmatpush3.bf16.msra.mxu0 %v1378_v50  ;;  %v357_v33 = vld [vmem:[%s2278_s2 + $0x148] sm:$0xff]  ;;  %v374_v36 = vld [vmem:[%s2278_s2 + $0x1d0] sm:$0xff]  ;;  %v375_v37 = vld [vmem:[%s2278_s2 + $0x1d8] sm:$0xff]  ;;  %v1394_v38 = vpack.c.bf16 %v325_v30, %v324_v29  ;;  %v1396_v40 = vpack.c.bf16 %v343_v35, %v342_v34 }
  0x35   : > { %1411 = vmatpush3.bf16.msra.mxu1 %v1410_v51  ;;  %1381 = vmatprep.subr.bf16.mxu0 %v1380_v52  ;;  %v1426_v39 = vpack.c.bf16 %v357_v33, %v356_v31  ;;  %v326_v41 = vld [vmem:[%s2278_s2 + $0x50] sm:$0xff]  ;;  %v327_v42 = vld [vmem:[%s2278_s2 + $0x58] sm:$0xff]  ;;  %v1428_v44 = vpack.c.bf16 %v375_v37, %v374_v36  ;;  %v344_v46 = vld [vmem:[%s2278_s2 + $0xe0] sm:$0xff] }
  0x36   : > { %1413 = vmatprep.subr.bf16.mxu1 %v1412_v56  ;;  %648 = vmatprep.mubr.f32.mxu0 %v2038_v25  ;;  %v358_v43 = vld [vmem:[%s2278_s2 + $0x150] sm:$0xff]  ;;  %v359_v45 = vld [vmem:[%s2278_s2 + $0x158] sm:$0xff]  ;;  %v345_v47 = vld [vmem:[%s2278_s2 + $0xe8] sm:$0xff]  ;;  %v1398_v52 = vpack.c.bf16 %v327_v42, %v326_v41 }
  0x37   : > { %718 = vmatprep.mubr.f32.mxu1 %v2041_v26  ;;  %v376_v50 = vld [vmem:[%s2278_s2 + $0x1e0] sm:$0xff]  ;;  %v377_v51 = vld [vmem:[%s2278_s2 + $0x1e8] sm:$0xff]  ;;  %v1430_v53 = vpack.c.bf16 %v359_v45, %v358_v43  ;;  %v1400_v54 = vpack.c.bf16 %v345_v47, %v344_v46  ;;  %v346_v60 = vld [vmem:[%s2278_s2 + $0xf0] sm:$0xff] }
  0x38   : > { %1383 = vmatpush3.bf16.msra.mxu0 %v1382_v62  ;;  %v328_v55 = vld [vmem:[%s2278_s2 + $0x60] sm:$0xff]  ;;  %v329_v56 = vld [vmem:[%s2278_s2 + $0x68] sm:$0xff]  ;;  %v1432_v58 = vpack.c.bf16 %v377_v51, %v376_v50  ;;  %v347_v61 = vld [vmem:[%s2278_s2 + $0xf8] sm:$0xff] }
  0x39   : > { %1415 = vmatpush3.bf16.msra.mxu1 %v1414_v63  ;;  %1385 = vmatprep.subr.bf16.mxu0 %v1384_v0  ;;  %v360_v57 = vld [vmem:[%s2278_s2 + $0x160] sm:$0xff]  ;;  %v361_v59 = vld [vmem:[%s2278_s2 + $0x168] sm:$0xff]  ;;  %v378_v62 = vld [vmem:[%s2278_s2 + $0x1f0] sm:$0xff]  ;;  %v1402_v0 = vpack.c.bf16 %v329_v56, %v328_v55  ;;  %v1404_v2 = vpack.c.bf16 %v347_v61, %v346_v60 }
  0x3a   : > { %1417 = vmatprep.subr.bf16.mxu1 %v1416_v4  ;;  %v379_v63 = vld [vmem:[%s2278_s2 + $0x1f8] sm:$0xff]  ;;  %v1434_v1 = vpack.c.bf16 %v361_v59, %v360_v57  ;;  %v330_v3 = vld [vmem:[%s2278_s2 + $0x70] sm:$0xff]  ;;  %v824_v37 = vld [vmem:[%s2281_s5 + $0x8] sm:$0xff] }
  0x3b   : > { %v331_v4 = vld [vmem:[%s2278_s2 + $0x78] sm:$0xff]  ;;  %v1436_v5 = vpack.c.bf16 %v379_v63, %v378_v62  ;;  %v362_v6 = vld [vmem:[%s2278_s2 + $0x170] sm:$0xff]  ;;  %v823_v42 = vld [vmem:[%s2281_s5] sm:$0xff] }
  0x3c   : > { %1387 = vmatpush3.bf16.msra.mxu0 %v1386_v10  ;;  %v363_v7 = vld [vmem:[%s2278_s2 + $0x178] sm:$0xff]  ;;  %v1406_v8 = vpack.c.bf16 %v331_v4, %v330_v3  ;;  %v2130_v10 = vld [vmem:[%s2020_s29] sm:$0xff]  ;;  %v825_v46 = vld [vmem:[%s2281_s5 + $0x10] sm:$0xff] }
  0x3d   : > { %1419 = vmatpush3.bf16.msra.mxu1 %v1418_v11  ;;  %1389 = vmatprep.subr.bf16.mxu0 %v1388_v12  ;;  %v1438_v9 = vpack.c.bf16 %v363_v7, %v362_v6  ;;  %v2133_v11 = vld [vmem:[%s2020_s29 + $0x10] sm:$0xff]  ;;  %v725_v12 = vld [vmem:[%s2280_s4] sm:$0xf]  ;;  %s1609_s29 = smov 96   ;;  %v830_v41 = vld [vmem:[%s2281_s5 + $0x38] sm:$0xff] }
  0x3e   : > { %1421 = vmatprep.subr.bf16.mxu1 %v1420_v18  ;;  %v827_v43 = vld [vmem:[%s2281_s5 + $0x20] sm:$0xff]  ;;  %v829_v47 = vld [vmem:[%s2281_s5 + $0x30] sm:$0xff]  ;;  %v832_v50 = vld [vmem:[%s2281_s5 + $0x48] sm:$0xff] }
  0x3f   : > { %v1442_v45 = vpack.c.bf16 %v827_v43, %v823_v42  ;;  %v1450_v51 = vpack.c.bf16 %v829_v47, %v825_v46  ;;  %v831_v57 = vld [vmem:[%s2281_s5 + $0x40] sm:$0xff]  ;;  %v833_v59 = vld [vmem:[%s2281_s5 + $0x50] sm:$0xff] }
  0x40   : > { %1391 = vmatpush3.bf16.msra.mxu0 %v1390_v24  ;;  %v837_v61 = vld [vmem:[%s2281_s5 + $0x70] sm:$0xff] }
  0x41   : > { %1423 = vmatpush3.bf16.msra.mxu1 %v1422_v27  ;;  %1393 = vmatprep.subr.bf16.mxu0 %v1392_v28  ;;  %v1454_v62 = vpack.c.bf16 %v837_v61, %v833_v59 }
  0x42   : > { %1425 = vmatprep.subr.bf16.mxu1 %v1424_v32 }
  0x44   : > { %1395 = vmatpush3.bf16.msra.mxu0 %v1394_v38  ;;  %v828_v38 = vld [vmem:[%s2281_s5 + $0x28] sm:$0xff] }
  0x45   : > { %1427 = vmatpush3.bf16.msra.mxu1 %v1426_v39  ;;  %1397 = vmatprep.subr.bf16.mxu0 %v1396_v40  ;;  %v826_v39 = vld [vmem:[%s2281_s5 + $0x18] sm:$0xff]  ;;  %v1440_v40 = vpack.c.bf16 %v828_v38, %v824_v37 }
  0x46   : > { %1429 = vmatprep.subr.bf16.mxu1 %v1428_v44  ;;  %v1448_v44 = vpack.c.bf16 %v830_v41, %v826_v39 }
  0x48   : > { %1399 = vmatpush3.bf16.msra.mxu0 %v1398_v52  ;;  %v836_v52 = vld [vmem:[%s2281_s5 + $0x68] sm:$0xff] }
  0x49   : > { %1431 = vmatpush3.bf16.msra.mxu1 %v1430_v53  ;;  %1401 = vmatprep.subr.bf16.mxu0 %v1400_v54  ;;  %v834_v53 = vld [vmem:[%s2281_s5 + $0x58] sm:$0xff]  ;;  %v1444_v55 = vpack.c.bf16 %v836_v52, %v832_v50 }
  0x4a   : > { %1433 = vmatprep.subr.bf16.mxu1 %v1432_v58  ;;  %v838_v54 = vld [vmem:[%s2281_s5 + $0x78] sm:$0xff]  ;;  %v835_v58 = vld [vmem:[%s2281_s5 + $0x60] sm:$0xff] }
  0x4b   : > { %v1452_v56 = vpack.c.bf16 %v838_v54, %v834_v53  ;;  %v1446_v60 = vpack.c.bf16 %v835_v58, %v831_v57 }
  0x4c   : > { %1403 = vmatpush3.bf16.msra.mxu0 %v1402_v0 }
  0x4d   : > { %1435 = vmatpush3.bf16.msra.mxu1 %v1434_v1  ;;  %1405 = vmatprep.subr.bf16.mxu0 %v1404_v2 }
  0x4e   : > { %1437 = vmatprep.subr.bf16.mxu1 %v1436_v5 }
  0x50   : > { %1407 = vmatpush3.bf16.msra.mxu0 %v1406_v8 }
  0x51   : > { %1439 = vmatpush3.bf16.msra.mxu1 %v1438_v9  ;;  %1307 = vmatprep.subr.mxu0 %v1607_v13 }
  0x52   : > { %1441 = vmatprep.subr.bf16.mxu1 %v1440_v40 }
  0x53   : > { %649 = vmatmul.mubr.f32.vlgmr.msra.gmra.mrb[2].mxu0 %v2130_v10 }
  0x54   : > { %719 = vmatmul.mubr.f32.vlgmr.msra.gmra.mrb[2].mxu1 %v2133_v11  ;;  %1309 = vmatprep.mubr.msk.f32.mxu0 %vm1608_vm1, %v1607_v13 }
  0x55   : > { %1308 = vmatpush3.msk.msra.mxu0 %vm730_vm0, %v725_v12  ;;  %907 = vmatprep.mubr.f32.mxu1 %v1607_v13 }
  0x56   : > { %1449 = vmatprep.subr.bf16.mxu0 %v1448_v44  ;;  %1443 = vmatpush1.bf16.msra.mxu1 %v1442_v45 }
  0x57   : > { %1445 = vmatprep.subr.bf16.mxu1 %v1444_v55 }
  0x5a   : > { %1447 = vmatpush1.bf16.msra.mxu1 %v1446_v60 }
 0x106   : > { %v1197_v14 = vpop.f32.mrb[0].mxu0 }
 0x107   : > { %v1232_v15 = vpop.f32.mrb[0].mxu1  ;;  %v1198_v18 = vpop.f32.mrb[1].mxu0 }
 0x108   : > { %v1199_v19 = vadd.f32 %v1198_v18, %v1197_v14  ;;  %v1233_v20 = vpop.f32.mrb[1].mxu1 }
 0x109   : > { %v1234_v21 = vadd.f32 %v1233_v20, %v1232_v15 }
 0x10b   : > { %v581_v22 = vadd.f32 %v1234_v21, %v1199_v19 }
 0x126   : > { %v1267_v23 = vpop.f32.mrb[2].mxu0 }
 0x127   : > { %v1268_v24 = vpop.f32.mrb[3].mxu0  ;;  %v1302_v27 = vpop.f32.mrb[2].mxu1 }
 0x128   : > { %v1269_v28 = vadd.f32 %v1268_v24, %v1267_v23  ;;  %v1303_v29 = vpop.f32.mrb[3].mxu1 }
 0x129   : > { %v1304_v30 = vadd.f32 %v1303_v29, %v1302_v27 }
 0x12a   : > { %v651_v31 = vadd.f32 %v1269_v28, %v581_v22 }
 0x12c   : > { %v721_v32 = vadd.f32 %v1304_v30, %v651_v31 }
 0x12e   : > { %1503 = vtanh.f32 %v721_v32 }
 0x138   : > { %v1504_v33 = vpop.eup %1503 }
 0x139   : > { %1310 = vmatmul.mubr.msk.f32.vlgmr.msra.gmra.mrb[4].mxu0 %vm726_vm2, %v1504_v33 }
 0x13a   : > { %978 = vmatprep.mubr.f32.mxu0 %v1607_v13  ;;  %1451 = vmatpush1.bf16.msra.mxu0 %v1450_v51 }
 0x13b   : > { %1453 = vmatprep.subr.bf16.mxu0 %v1452_v56 }
 0x13e   : > { %1455 = vmatpush1.bf16.msra.mxu0 %v1454_v62 }
 0x20c   : > { %v800_v34 = vpop.f32.mrb[4].mxu0 }
 0x20d   : > { %v804_v35 = vmul.f32 %v800_v34, %v800_v34  ;;  %v1311_v36 = vpop.f32.mrb[5].mxu0 }
 0x20f   : > { %806 = vrot.lane.b32.xlu0 %v804_v35, %s1609_s29 }
 0x281   : > { %v807_v63 = vpop.permute.xlu0 %806 }
 0x282   : > { %v809_v0 = vadd.f32 %v807_v63, %v804_v35 }
 0x284   : > { %1505 = vrsqrt.f32 %v809_v0  ;;  %vm812_vm3 = vcmp.eq.f32.partialorder %v809_v0, inf  ;;  %v815_v3 = vand.u32 2147483648, %v809_v0  ;;  %vm814_vm4 = vcmp.eq.f32.partialorder %v809_v0, 0.0 }
 0x28e   : > { %v1506_v1 = vpop.eup %1505 }
 0x28f   : > { %v811_v2 = vmul.f32 %v1506_v1, %v809_v0 }
 0x291   : > { %v813_v4 = vsel %vm812_vm3, %v809_v0, %v811_v2 }
 0x292   : > { %v816_v5 = vsel %vm814_vm4, %v815_v3, %v813_v4 }
 0x293   : > { %v1150_v6 = vmul.f32 -1.442695, %v816_v5 }
 0x295   : > { %1507 = vpow2.f32 %v1150_v6 }
 0x29f   : > { %v1508_v7 = vpop.eup %1507 }
 0x2a0   : > { %v820_v8 = vadd.f32 1.0, %v1508_v7 }
 0x2a2   : > { %1509 = vrcp.f32 %v820_v8 }
 0x2ac   : > { %v1510_v9 = vpop.eup %1509 }
 0x2ad   : > { %1151 = vmatmul.mubr.msk.f32.vlgmr.msra.gmra.mrb[4].mxu1 %vm839_vm5, %v1510_v9  ;;  %1152 = vmatmul.mubr.msk.f32.vlgmr.msra.gmra.mrb[6].mxu0 %vm839_vm5, %v1510_v9 }
 0x380   : > { %v909_v12 = vpop.f32.mrb[4].mxu1  ;;  %v980_v13 = vpop.f32.mrb[6].mxu0 }
 0x381   : > { %v985_v14 = vmul.f32 %v909_v12, %v2130_v10  ;;  %v993_v15 = vmul.f32 %v909_v12, %v1951_v48  ;;  %v987_v18 = vmul.f32 %v980_v13, %v2133_v11  ;;  %v995_v19 = vmul.f32 %v980_v13, %v1954_v49  ;;  %v911_v20 = vpop.f32.mrb[5].mxu1  ;;  %v982_v21 = vpop.f32.mrb[7].mxu0 }
 0x382   : > { %v986_v22 = vmul.f32 %v911_v20, %v2038_v25  ;;  %v994_v23 = vmul.f32 %v911_v20, %v1880_v16  ;;  %v988_v10 = vmul.f32 %v982_v21, %v2041_v26  ;;  %v996_v48 = vmul.f32 %v982_v21, %v1883_v17 }
 0x383   : > { %989 = vst [vmem:[%s290_s20] sm:$0xff] %v985_v14  ;;  %997 = vst [vmem:[%s297_s23] sm:$0xff] %v993_v15 }
 0x384   : > { %991 = vst [vmem:[%s290_s20 + $0x10] sm:$0xff] %v987_v18  ;;  %999 = vst [vmem:[%s297_s23 + $0x10] sm:$0xff] %v995_v19 }
 0x385   : > { %990 = vst [vmem:[%s290_s20 + $0x8] sm:$0xff] %v986_v22  ;;  %998 = vst [vmem:[%s297_s23 + $0x8] sm:$0xff] %v994_v23 }
 0x386   : > { %992 = vst [vmem:[%s290_s20 + $0x18] sm:$0xff] %v988_v10  ;;  %1000 = vst [vmem:[%s297_s23 + $0x18] sm:$0xff] %v996_v48 }
 0x387   : > { %1524 = shalt.err (!%p1521_p3)
}
 0x388   : > { %s1525_s18 = scalar_lea.hbm %s2200_s28, 512  ;;  %s1529_s29 = scalar_lea.hbm %s2282_s6, 1024 }
 0x389   : > { %p1526_p4 = scmp.ne.s32.totalorder %s2200_s28, %s1525_s18  ;;  %p1530_p9 = scmp.lt.u32.totalorder %s2200_s28, %s2282_s6 }
 0x38a   : > { %p1531_p10 = scmp.lt.u32.totalorder %s1529_s29, %s1525_s18  ;;  %p1533_p12 = scmp.lt.u32.totalorder %s1525_s18, %s2200_s28 }
 0x38b   : > { %p1527_p7 = pnand %p1526_p4, %p1690_p5 }
 0x38c   : > { %p1532_p11 = por %p1531_p10, %p1530_p9 }
 0x38d   : > { %p1528_p8 = pneg %p1527_p7 }
 0x38e   : > { %p1534_p13 = por %p1533_p12, %p1532_p11 }
 0x390   : > { %p1535_p0 = pnand %p1534_p13, %p1528_p8 }
 0x392   : > { %1538 = shalt.err (!%p1535_p0)
}
 0x393   : > { %1456 = dma.vmem_to_hbm [thread:$0]  (%p1690_p5), %s2206_s21, 512, %s2200_s28, %s1002_s16  }
 0x394   : > { %s1007_s15 = scalar_lea.sflag [#allocation5], %s2189_s17  ;;  %s1539_s22 = scalar_lea.vmem %s2213_s8, 512 }
 0x395   : > { %p1540_p1 = scmp.ne.s32.totalorder %s2213_s8, %s1539_s22  ;;  %s1611_s9 = smov [#allocation4]  }
 0x396   : > { %s1543_s18 = sshll.u32 %s1611_s9, 4  ;;  %s1544_s18 = int_to_ptr.vmem [resolvable:$false] %s1543_s18 }
 0x397   : > { %p1541_p2 = pnand %p1540_p1, %p1690_p5  ;;  %s1545_s20 = scalar_lea.vmem %s1544_s18, 1024 }
 0x398   : > { %p1546_p4 = scmp.lt.s32.totalorder %s2213_s8, %s1544_s18  ;;  %p1547_p7 = scmp.lt.s32.totalorder %s1545_s20, %s1539_s22 }
 0x399   : > { %p1542_p3 = pneg %p1541_p2 }
 0x39a   : > { %p1548_p8 = por %p1547_p7, %p1546_p4 }
 0x39c   : > { %p1549_p9 = pnand %p1548_p8, %p1542_p3 }
 0x39e   : > { %1552 = shalt.err (!%p1549_p9)
}
 0x39f   : > { %s1553_s17 = scalar_lea.hbm %s2211_s14, 512  ;;  %s1557_s16 = scalar_lea.hbm %s2283_s7, 1024 }
 0x3a0   : > { %p1554_p10 = scmp.ne.s32.totalorder %s2211_s14, %s1553_s17  ;;  %p1558_p13 = scmp.lt.u32.totalorder %s2211_s14, %s2283_s7 }
 0x3a1   : > { %p1559_p0 = scmp.lt.u32.totalorder %s1557_s16, %s1553_s17  ;;  %p1561_p2 = scmp.lt.u32.totalorder %s1553_s17, %s2211_s14 }
 0x3a2   : > { %p1555_p11 = pnand %p1554_p10, %p1690_p5 }
 0x3a3   : > { %p1560_p1 = por %p1559_p0, %p1558_p13 }
 0x3a4   : > { %p1556_p12 = pneg %p1555_p11 }
 0x3a5   : > { %p1562_p3 = por %p1561_p2, %p1560_p1 }
 0x3a7   : > { %p1563_p4 = pnand %p1562_p3, %p1556_p12 }
 0x3a9   : > { %1566 = shalt.err (!%p1563_p4)
}
 0x3aa   : > { %1457 = dma.vmem_to_hbm [thread:$0]  (%p1690_p5), %s2213_s8, 512, %s2211_s14, %s1007_s15  }
 0x3ab PF: > { %p1467_p7 = scmp.ge.s32.totalorder %s1605_s27, 2  ;;  %s1047_s13 = sand.u32 1, %s1593_s24  }
 0x3ac   : > { %s1048_s19 = scalar_lea.sflag [#allocation3], %s1047_s13 }
 0x3ad   : > { %p1461_p8 = pnand %p1467_p7, %p1694_p6 }
 0x3af   : > { %1584 = dma.done.wait (!%p1461_p8), %s1048_s19, 512  }
 0x3b0   : > { %1586 = vsyncadd (!%p1461_p8), %s1048_s19, 4294966784  ;;  %s1057_s22 = scalar_lea.sflag [#allocation5], %s1047_s13 }
 0x3b1   : > { %1588 = dma.done.wait (!%p1461_p8), %s1057_s22, 512  }
 0x3b2   : > { %1590 = vsyncadd (!%p1461_p8), %s1057_s22, 4294966784  ;;  %p21_p5 = scmp.ge.s32.totalorder %s1677_s30, 4   ;;  %s2286_s24 = smov %s1597_s25 }
 0x3b3   : > { %s2287_s25 = smov %s1601_s26  ;;  %s2288_s26 = smov %s1688_s10 }
 0x3b4   : > { %s2289_s27 = smov %s1677_s30  ;;  %23 = sbr.rel (!%p21_p5) target bundleno = 5 (0x5), region = 99 }
 0x3bb   :  { %1062 = vsyncpa [#allocation3], 1 }
 0x3bc   :  { %1064 = vsyncpa [#allocation3 + $0x1], 1 }
 0x3bd   :  { %1065 = vsyncpa [#allocation5], 1 }
 0x3be   :  { %1067 = vsyncpa [#allocation5 + $0x1], 1 }

// kernel: tpu_custom_call.1
= control target key start
LH: loop header
LB: loop body
LE: loop exit
PB: predicated region body
PF: predicated region fallthrough
CT: control target
= control target key end

     0   :  { %13 = vsyncpa [#allocation3], 0  ;;  %s2276_s0 = inlined_call_operand.vmem [shape: f32[16,512], index: 0, kind: input, shape index: {}]   ;;  %s2277_s1 = inlined_call_operand.vmem [shape: f32[16,512], index: 1, kind: input, shape index: {}]   ;;  %s2278_s2 = inlined_call_operand.vmem [shape: f32[512,4], index: 2, kind: input, shape index: {}]   ;;  %s2279_s3 = inlined_call_operand.vmem [shape: f32[512,4], index: 3, kind: input, shape index: {}]   ;;  %s2280_s4 = inlined_call_operand.vmem [shape: f32[4,64], index: 4, kind: input, shape index: {}]   ;;  %s2281_s5 = inlined_call_operand.vmem [shape: f32[32,512], index: 5, kind: input, shape index: {}]   ;;  %s2282_s6 = inlined_call_operand.hbm [shape: f32[16,512], index: 6, kind: output, shape index: {0}]   ;;  %s2283_s7 = inlined_call_operand.hbm [shape: f32[16,512], index: 7, kind: output, shape index: {1}]  }
   0x1   :  { %15 = vsyncpa [#allocation3 + $0x1], 0 }
   0x2   :  { %16 = vsyncpa [#allocation5], 0 }
   0x3   :  { %18 = vsyncpa [#allocation5 + $0x1], 0  ;;  %s1652_s24 = smov 0   ;;  %s1654_s25 = smov 0  }
   0x4   :  { %s1656_s26 = smov 0   ;;  %s1658_s27 = smov 0  }
   0x5 LB: > { %s1673_s28 = sadd.s32 4294967295, %s1605_s27   ;;  %s1138_s29 = sadd.s32 4294967294, %s1605_s27   ;;  %s1605_s27 = sphi %s1658_s27, %s2289_s27   ;;  %s1601_s26 = sphi %s1656_s26, %s2288_s26   ;;  %s1597_s25 = sphi %s1654_s25, %s2287_s25   ;;  %s1593_s24 = sphi %s1652_s24, %s2286_s24  }
   0x6   : > { %s1677_s30 = sadd.s32 1, %s1605_s27   ;;  %s167_s8 = sadd.s32 1, %s1601_s26 }
   0x7   : > { %s164_s9 = ssub.s32 %s1605_s27, %s1677_s30  ;;  %p177_p0 = scmp.ne.s32.totalorder %s1601_s26, %s1597_s25 }
   0x8   : > { %p165_p1 = scmp.eq.s32.totalorder %s164_s9, 0  ;;  %p178_p2 = scmp.eq.s32.totalorder %s1673_s28, 1 }
   0x9   : > { %p183_p3 = scmp.ne.s32.totalorder %s1597_s25, %s1593_s24  ;;  %p184_p4 = scmp.eq.s32.totalorder %s1138_s29, 1 }
   0xa   : > { %s1688_s10 = scalar_select %p165_p1, %s1601_s26, %s167_s8  }
   0xb   : > { %p1690_p5 = por %p178_p2, %p177_p0  ;;  %p1694_p6 = por %p184_p4, %p183_p3 }
   0xc   : > { %p1141_p7 = scmp.ge.s32.totalorder %s1605_s27, 1  ;;  %p256_p8 = scmp.lt.s32.totalorder %s1605_s27, 3 }
   0xe   : > { %p257_p9 = pnand %p1141_p7, %p256_p8 }
   0xf   : > { %v396_v0 = vld [vmem:[%s2279_s3 + $0x80] sm:$0xff] (!%p257_p9)  ;;  %v397_v1 = vld [vmem:[%s2279_s3 + $0x88] sm:$0xff] (!%p257_p9)  ;;  %v398_v11 = vld [vmem:[%s2279_s3 + $0x90] sm:$0xff] (!%p257_p9)  ;;  %p298_p10 = scmp.lt.s32.totalorder (!%p257_p9), %s1673_s28, 1  ;;  %vm730_vm0 = vcmask (!%p257_p9), 1043456   ;;  %vm1608_vm1 = vmmov (!%p257_p9), 0  }
  0x10   : > { %260 = sbr.rel (%p257_p9) target bundleno = 939 (0x3ab), region = 44  ;;  %v428_v2 = vld [vmem:[%s2279_s3 + $0x180] sm:$0xff] (!%p257_p9)  ;;  %v1312_v3 = vpack.c.bf16 (!%p257_p9), %v397_v1, %v396_v0  ;;  %v429_v4 = vld [vmem:[%s2279_s3 + $0x188] sm:$0xff] (!%p257_p9)  ;;  %v399_v13 = vld [vmem:[%s2279_s3 + $0x98] sm:$0xff] (!%p257_p9)  ;;  %vm726_vm2 = vcmask (!%p257_p9), 31744   ;;  %vm839_vm5 = vcmask (!%p257_p9), 261120  }
  0x11   : > { %v380_v5 = vld [vmem:[%s2279_s3] sm:$0xff] (!%p257_p9)  ;;  %v381_v6 = vld [vmem:[%s2279_s3 + $0x8] sm:$0xff] (!%p257_p9)  ;;  %v1344_v7 = vpack.c.bf16 (!%p257_p9), %v429_v4, %v428_v2  ;;  %v430_v14 = vld [vmem:[%s2279_s3 + $0x190] sm:$0xff] (!%p257_p9)  ;;  %v1316_v16 = vpack.c.bf16 (!%p257_p9), %v399_v13, %v398_v11  ;;  %s2189_s17 = sand.u32 (!%p257_p9), 1, %s1597_s25   ;;  %s1163_s18 = sshll.u32 (!%p257_p9), %s1673_s28, 9 }
  0x12   : > { %v1314_v8 = vpack.c.bf16 (!%p257_p9), %v381_v6, %v380_v5  ;;  %v412_v9 = vld [vmem:[%s2279_s3 + $0x100] sm:$0xff] (!%p257_p9)  ;;  %v413_v10 = vld [vmem:[%s2279_s3 + $0x108] sm:$0xff] (!%p257_p9)  ;;  %1313 = vmatprep.subr.bf16.mxu0 (!%p257_p9), %v1312_v3  ;;  %v431_v15 = vld [vmem:[%s2279_s3 + $0x198] sm:$0xff] (!%p257_p9)  ;;  %s2211_s14 = scalar_lea.hbm (!%p257_p9), %s2283_s7, %s1163_s18  ;;  %s1002_s16 = scalar_lea.sflag (!%p257_p9), [#allocation3], %s2189_s17 }
  0x13   : > { %v1346_v12 = vpack.c.bf16 (!%p257_p9), %v413_v10, %v412_v9  ;;  %1345 = vmatprep.subr.bf16.mxu1 (!%p257_p9), %v1344_v7  ;;  %v1348_v17 = vpack.c.bf16 (!%p257_p9), %v431_v15, %v430_v14  ;;  %v382_v18 = vld [vmem:[%s2279_s3 + $0x10] sm:$0xff] (!%p257_p9)  ;;  %v383_v19 = vld [vmem:[%s2279_s3 + $0x18] sm:$0xff] (!%p257_p9)  ;;  %v400_v23 = vld [vmem:[%s2279_s3 + $0xa0] sm:$0xff] (!%p257_p9) }
  0x14   : > { %1315 = vmatpush3.bf16.msra.mxu0 (!%p257_p9), %v1314_v8  ;;  %v414_v20 = vld [vmem:[%s2279_s3 + $0x110] sm:$0xff] (!%p257_p9)  ;;  %v1318_v21 = vpack.c.bf16 (!%p257_p9), %v383_v19, %v382_v18  ;;  %v415_v22 = vld [vmem:[%s2279_s3 + $0x118] sm:$0xff] (!%p257_p9)  ;;  %v401_v24 = vld [vmem:[%s2279_s3 + $0xa8] sm:$0xff] (!%p257_p9) }
  0x15   : > { %1347 = vmatpush3.bf16.msra.mxu1 (!%p257_p9), %v1346_v12  ;;  %1317 = vmatprep.subr.bf16.mxu0 (!%p257_p9), %v1316_v16  ;;  %v1350_v25 = vpack.c.bf16 (!%p257_p9), %v415_v22, %v414_v20  ;;  %v1320_v26 = vpack.c.bf16 (!%p257_p9), %v401_v24, %v400_v23  ;;  %v432_v27 = vld [vmem:[%s2279_s3 + $0x1a0] sm:$0xff] (!%p257_p9)  ;;  %v433_v28 = vld [vmem:[%s2279_s3 + $0x1a8] sm:$0xff] (!%p257_p9)  ;;  %v402_v35 = vld [vmem:[%s2279_s3 + $0xb0] sm:$0xff] (!%p257_p9) }
  0x16   : > { %1349 = vmatprep.subr.bf16.mxu1 (!%p257_p9), %v1348_v17  ;;  %v384_v29 = vld [vmem:[%s2279_s3 + $0x20] sm:$0xff] (!%p257_p9)  ;;  %v1352_v30 = vpack.c.bf16 (!%p257_p9), %v433_v28, %v432_v27  ;;  %v385_v31 = vld [vmem:[%s2279_s3 + $0x28] sm:$0xff] (!%p257_p9)  ;;  %v403_v36 = vld [vmem:[%s2279_s3 + $0xb8] sm:$0xff] (!%p257_p9) }
  0x17   : > { %v416_v32 = vld [vmem:[%s2279_s3 + $0x120] sm:$0xff]  ;;  %v417_v33 = vld [vmem:[%s2279_s3 + $0x128] sm:$0xff]  ;;  %v1322_v34 = vpack.c.bf16 %v385_v31, %v384_v29  ;;  %v434_v37 = vld [vmem:[%s2279_s3 + $0x1b0] sm:$0xff]  ;;  %v1324_v39 = vpack.c.bf16 %v403_v36, %v402_v35  ;;  %s1812_s15 = scalar_select %p298_p10, %s1673_s28, 1 }
  0x18   : > { %1319 = vmatpush3.bf16.msra.mxu0 %v1318_v21  ;;  %v1354_v38 = vpack.c.bf16 %v417_v33, %v416_v32  ;;  %v435_v40 = vld [vmem:[%s2279_s3 + $0x1b8] sm:$0xff]  ;;  %v386_v41 = vld [vmem:[%s2279_s3 + $0x30] sm:$0xff]  ;;  %v404_v46 = vld [vmem:[%s2279_s3 + $0xc0] sm:$0xff]  ;;  %s2200_s28 = scalar_lea.hbm %s2282_s6, %s1163_s18 }
  0x19   : > { %1351 = vmatpush3.bf16.msra.mxu1 %v1350_v25  ;;  %1321 = vmatprep.subr.bf16.mxu0 %v1320_v26  ;;  %v387_v42 = vld [vmem:[%s2279_s3 + $0x38] sm:$0xff]  ;;  %v1356_v43 = vpack.c.bf16 %v435_v40, %v434_v37  ;;  %v418_v44 = vld [vmem:[%s2279_s3 + $0x130] sm:$0xff]  ;;  %v405_v47 = vld [vmem:[%s2279_s3 + $0xc8] sm:$0xff]  ;;  %s1161_s19 = sshll.u32 %s1812_s15, 5 }
  0x1a   : > { %1353 = vmatprep.subr.bf16.mxu1 %v1352_v30  ;;  %v419_v45 = vld [vmem:[%s2279_s3 + $0x138] sm:$0xff]  ;;  %v436_v48 = vld [vmem:[%s2279_s3 + $0x1c0] sm:$0xff]  ;;  %v437_v49 = vld [vmem:[%s2279_s3 + $0x1c8] sm:$0xff]  ;;  %v1326_v50 = vpack.c.bf16 %v387_v42, %v386_v41  ;;  %v1328_v52 = vpack.c.bf16 %v405_v47, %v404_v46  ;;  %s1862_s22 = scalar_lea.vmem %s2277_s1, %s1161_s19  ;;  %s2020_s29 = scalar_lea.vmem %s2276_s0, %s1161_s19 }
  0x1b   : > { %v1358_v51 = vpack.c.bf16 %v419_v45, %v418_v44  ;;  %v388_v53 = vld [vmem:[%s2279_s3 + $0x40] sm:$0xff]  ;;  %v389_v54 = vld [vmem:[%s2279_s3 + $0x48] sm:$0xff]  ;;  %v1360_v56 = vpack.c.bf16 %v437_v49, %v436_v48  ;;  %v406_v58 = vld [vmem:[%s2279_s3 + $0xd0] sm:$0xff]  ;;  %s1142_s19 = sshll.u32 %s2189_s17, 5 }
  0x1c   : > { %1323 = vmatpush3.bf16.msra.mxu0 %v1322_v34  ;;  %v420_v55 = vld [vmem:[%s2279_s3 + $0x140] sm:$0xff]  ;;  %v421_v57 = vld [vmem:[%s2279_s3 + $0x148] sm:$0xff]  ;;  %v407_v59 = vld [vmem:[%s2279_s3 + $0xd8] sm:$0xff]  ;;  %v1330_v62 = vpack.c.bf16 %v389_v54, %v388_v53  ;;  %s290_s20 = scalar_lea.vmem [#allocation2], %s1142_s19  ;;  %s297_s23 = scalar_lea.vmem [#allocation4], %s1142_s19 }
  0x1d   : > { %1355 = vmatpush3.bf16.msra.mxu1 %v1354_v38  ;;  %1325 = vmatprep.subr.bf16.mxu0 %v1324_v39  ;;  %v438_v60 = vld [vmem:[%s2279_s3 + $0x1d0] sm:$0xff]  ;;  %v439_v61 = vld [vmem:[%s2279_s3 + $0x1d8] sm:$0xff]  ;;  %v1362_v63 = vpack.c.bf16 %v421_v57, %v420_v55  ;;  %v1332_v0 = vpack.c.bf16 %v407_v59, %v406_v58  ;;  %v408_v6 = vld [vmem:[%s2279_s3 + $0xe0] sm:$0xff]  ;;  %s1021_s21 = sshll.u32 %s290_s20, 4  ;;  %s1035_s8 = sshll.u32 %s297_s23, 4  ;;  %s2206_s21 = int_to_ptr.vmem [resolvable:$true] %s1021_s21  ;;  %s2213_s8 = int_to_ptr.vmem [resolvable:$true] %s1035_s8 }
  0x1e   : > { %1357 = vmatprep.subr.bf16.mxu1 %v1356_v43  ;;  %v390_v1 = vld [vmem:[%s2279_s3 + $0x50] sm:$0xff]  ;;  %v391_v2 = vld [vmem:[%s2279_s3 + $0x58] sm:$0xff]  ;;  %v1364_v4 = vpack.c.bf16 %v439_v61, %v438_v60  ;;  %v409_v7 = vld [vmem:[%s2279_s3 + $0xe8] sm:$0xff]  ;;  %s1511_s15 = scalar_lea.vmem %s2206_s21, 512  ;;  %s1610_s19 = smov [#allocation2]  }
  0x1f   : > { %v422_v3 = vld [vmem:[%s2279_s3 + $0x150] sm:$0xff]  ;;  %v423_v5 = vld [vmem:[%s2279_s3 + $0x158] sm:$0xff]  ;;  %v440_v8 = vld [vmem:[%s2279_s3 + $0x1e0] sm:$0xff]  ;;  %v1334_v10 = vpack.c.bf16 %v391_v2, %v390_v1  ;;  %v1336_v14 = vpack.c.bf16 %v409_v7, %v408_v6  ;;  %p1512_p11 = scmp.ne.s32.totalorder %s2206_s21, %s1511_s15 }
  0x20   : > { %1327 = vmatpush3.bf16.msra.mxu0 %v1326_v50  ;;  %v441_v9 = vld [vmem:[%s2279_s3 + $0x1e8] sm:$0xff]  ;;  %v392_v11 = vld [vmem:[%s2279_s3 + $0x60] sm:$0xff]  ;;  %v1366_v13 = vpack.c.bf16 %v423_v5, %v422_v3  ;;  %v1883_v17 = vld [vmem:[%s1862_s22 + $0x18] sm:$0xff] }
  0x21   : > { %1359 = vmatpush3.bf16.msra.mxu1 %v1358_v51  ;;  %1329 = vmatprep.subr.bf16.mxu0 %v1328_v52  ;;  %v393_v12 = vld [vmem:[%s2279_s3 + $0x68] sm:$0xff]  ;;  %v424_v15 = vld [vmem:[%s2279_s3 + $0x160] sm:$0xff]  ;;  %v1368_v18 = vpack.c.bf16 %v441_v9, %v440_v8  ;;  %v410_v20 = vld [vmem:[%s2279_s3 + $0xf0] sm:$0xff]  ;;  %p1513_p12 = pnand %p1512_p11, %p1690_p5 }
  0x22   : > { %1361 = vmatprep.subr.bf16.mxu1 %v1360_v56  ;;  %v1880_v16 = vld [vmem:[%s1862_s22 + $0x8] sm:$0xff]  ;;  %v411_v21 = vld [vmem:[%s2279_s3 + $0xf8] sm:$0xff]  ;;  %v442_v22 = vld [vmem:[%s2279_s3 + $0x1f0] sm:$0xff]  ;;  %578 = vmatprep.mubr.f32.mxu1 %v1883_v17  ;;  %v1338_v24 = vpack.c.bf16 %v393_v12, %v392_v11 }
  0x23   : > { %v425_v19 = vld [vmem:[%s2279_s3 + $0x168] sm:$0xff]  ;;  %508 = vmatprep.mubr.f32.mxu0 %v1880_v16  ;;  %v443_v23 = vld [vmem:[%s2279_s3 + $0x1f8] sm:$0xff]  ;;  %v1340_v26 = vpack.c.bf16 %v411_v21, %v410_v20  ;;  %v394_v27 = vld [vmem:[%s2279_s3 + $0x70] sm:$0xff]  ;;  %p1514_p13 = pneg %p1513_p12 }
  0x24   : > { %1331 = vmatpush3.bf16.msra.mxu0 %v1330_v62  ;;  %v1370_v25 = vpack.c.bf16 %v425_v19, %v424_v15  ;;  %v395_v28 = vld [vmem:[%s2279_s3 + $0x78] sm:$0xff]  ;;  %v426_v29 = vld [vmem:[%s2279_s3 + $0x170] sm:$0xff]  ;;  %v1372_v30 = vpack.c.bf16 %v443_v23, %v442_v22  ;;  %v332_v32 = vld [vmem:[%s2278_s2 + $0x80] sm:$0xff] }
  0x25   : > { %1363 = vmatpush3.bf16.msra.mxu1 %v1362_v63  ;;  %1333 = vmatprep.subr.bf16.mxu0 %v1332_v0  ;;  %v427_v31 = vld [vmem:[%s2279_s3 + $0x178] sm:$0xff]  ;;  %v333_v33 = vld [vmem:[%s2278_s2 + $0x88] sm:$0xff]  ;;  %v364_v34 = vld [vmem:[%s2278_s2 + $0x180] sm:$0xff]  ;;  %v1342_v36 = vpack.c.bf16 %v395_v28, %v394_v27 }
  0x26   : > { %1365 = vmatprep.subr.bf16.mxu1 %v1364_v4  ;;  %v365_v35 = vld [vmem:[%s2278_s2 + $0x188] sm:$0xff]  ;;  %v1374_v37 = vpack.c.bf16 %v427_v31, %v426_v29  ;;  %v1376_v38 = vpack.c.bf16 %v333_v33, %v332_v32  ;;  %v316_v39 = vld [vmem:[%s2278_s2] sm:$0xff]  ;;  %v334_v44 = vld [vmem:[%s2278_s2 + $0x90] sm:$0xff] }
  0x27   : > { %v317_v40 = vld [vmem:[%s2278_s2 + $0x8] sm:$0xff]  ;;  %v348_v41 = vld [vmem:[%s2278_s2 + $0x100] sm:$0xff]  ;;  %v1408_v42 = vpack.c.bf16 %v365_v35, %v364_v34  ;;  %v335_v45 = vld [vmem:[%s2278_s2 + $0x98] sm:$0xff] }
  0x28   : > { %1335 = vmatpush3.bf16.msra.mxu0 %v1334_v10  ;;  %v349_v43 = vld [vmem:[%s2278_s2 + $0x108] sm:$0xff]  ;;  %v366_v46 = vld [vmem:[%s2278_s2 + $0x190] sm:$0xff]  ;;  %v367_v47 = vld [vmem:[%s2278_s2 + $0x198] sm:$0xff]  ;;  %v1378_v50 = vpack.c.bf16 %v317_v40, %v316_v39  ;;  %v1380_v52 = vpack.c.bf16 %v335_v45, %v334_v44 }
  0x29   : > { %1367 = vmatpush3.bf16.msra.mxu1 %v1366_v13  ;;  %1337 = vmatprep.subr.bf16.mxu0 %v1336_v14  ;;  %v1951_v48 = vld [vmem:[%s1862_s22] sm:$0xff]  ;;  %v1954_v49 = vld [vmem:[%s1862_s22 + $0x10] sm:$0xff]  ;;  %v1410_v51 = vpack.c.bf16 %v349_v43, %v348_v41  ;;  %v319_v54 = vld [vmem:[%s2278_s2 + $0x18] sm:$0xff]  ;;  %v1412_v56 = vpack.c.bf16 %v367_v47, %v366_v46  ;;  %s1515_s22 = sshll.u32 %s1610_s19, 4  ;;  %s1516_s22 = int_to_ptr.vmem [resolvable:$false] %s1515_s22 }
  0x2a   : > { %1369 = vmatprep.subr.bf16.mxu1 %v1368_v18  ;;  %v318_v53 = vld [vmem:[%s2278_s2 + $0x10] sm:$0xff]  ;;  %v351_v57 = vld [vmem:[%s2278_s2 + $0x118] sm:$0xff]  ;;  %v336_v58 = vld [vmem:[%s2278_s2 + $0xa0] sm:$0xff]  ;;  %s1517_s9 = scalar_lea.vmem %s1516_s22, 1024  ;;  %p1518_p0 = scmp.lt.s32.totalorder %s2206_s21, %s1516_s22 }
  0x2b   : > { %v350_v55 = vld [vmem:[%s2278_s2 + $0x110] sm:$0xff]  ;;  %v337_v59 = vld [vmem:[%s2278_s2 + $0xa8] sm:$0xff]  ;;  %v368_v60 = vld [vmem:[%s2278_s2 + $0x1a0] sm:$0xff]  ;;  %v1382_v62 = vpack.c.bf16 %v319_v54, %v318_v53  ;;  %p1519_p1 = scmp.lt.s32.totalorder %s1517_s9, %s1511_s15 }
  0x2c   : > { %1339 = vmatpush3.bf16.msra.mxu0 %v1338_v24  ;;  %v369_v61 = vld [vmem:[%s2278_s2 + $0x1a8] sm:$0xff]  ;;  %v1414_v63 = vpack.c.bf16 %v351_v57, %v350_v55  ;;  %v1384_v0 = vpack.c.bf16 %v337_v59, %v336_v58  ;;  %v320_v1 = vld [vmem:[%s2278_s2 + $0x20] sm:$0xff]  ;;  %v338_v6 = vld [vmem:[%s2278_s2 + $0xb0] sm:$0xff] }
  0x2d   : > { %1371 = vmatpush3.bf16.msra.mxu1 %v1370_v25  ;;  %1341 = vmatprep.subr.bf16.mxu0 %v1340_v26  ;;  %v321_v2 = vld [vmem:[%s2278_s2 + $0x28] sm:$0xff]  ;;  %v352_v3 = vld [vmem:[%s2278_s2 + $0x120] sm:$0xff]  ;;  %v1416_v4 = vpack.c.bf16 %v369_v61, %v368_v60  ;;  %v339_v7 = vld [vmem:[%s2278_s2 + $0xb8] sm:$0xff]  ;;  %p1520_p2 = por %p1519_p1, %p1518_p0 }
  0x2e   : > { %1373 = vmatprep.subr.bf16.mxu1 %v1372_v30  ;;  %v353_v5 = vld [vmem:[%s2278_s2 + $0x128] sm:$0xff]  ;;  %v370_v8 = vld [vmem:[%s2278_s2 + $0x1b0] sm:$0xff]  ;;  %v371_v9 = vld [vmem:[%s2278_s2 + $0x1b8] sm:$0xff]  ;;  %v1386_v10 = vpack.c.bf16 %v321_v2, %v320_v1  ;;  %v1388_v12 = vpack.c.bf16 %v339_v7, %v338_v6 }
  0x2f   : > { %v1418_v11 = vpack.c.bf16 %v353_v5, %v352_v3  ;;  %v322_v13 = vld [vmem:[%s2278_s2 + $0x30] sm:$0xff]  ;;  %v323_v14 = vld [vmem:[%s2278_s2 + $0x38] sm:$0xff]  ;;  %v1420_v18 = vpack.c.bf16 %v371_v9, %v370_v8  ;;  %v340_v20 = vld [vmem:[%s2278_s2 + $0xc0] sm:$0xff]  ;;  %p1521_p3 = pnand %p1520_p2, %p1514_p13 }
  0x30   : > { %1343 = vmatpush3.bf16.msra.mxu0 %v1342_v36  ;;  %v354_v15 = vld [vmem:[%s2278_s2 + $0x130] sm:$0xff]  ;;  %v355_v19 = vld [vmem:[%s2278_s2 + $0x138] sm:$0xff]  ;;  %v341_v21 = vld [vmem:[%s2278_s2 + $0xc8] sm:$0xff]  ;;  %v1390_v24 = vpack.c.bf16 %v323_v14, %v322_v13  ;;  %v1607_v13 = vmov 0.0  }
  0x31   : > { %1375 = vmatpush3.bf16.msra.mxu1 %v1374_v37  ;;  %1377 = vmatprep.subr.bf16.mxu0 %v1376_v38  ;;  %v372_v22 = vld [vmem:[%s2278_s2 + $0x1c0] sm:$0xff]  ;;  %v373_v23 = vld [vmem:[%s2278_s2 + $0x1c8] sm:$0xff]  ;;  %v2041_v26 = vld [vmem:[%s2020_s29 + $0x18] sm:$0xff]  ;;  %v1422_v27 = vpack.c.bf16 %v355_v19, %v354_v15  ;;  %v1392_v28 = vpack.c.bf16 %v341_v21, %v340_v20 }
  0x32   : > { %1409 = vmatprep.subr.bf16.mxu1 %v1408_v42  ;;  %v2038_v25 = vld [vmem:[%s2020_s29 + $0x8] sm:$0xff]  ;;  %v324_v29 = vld [vmem:[%s2278_s2 + $0x40] sm:$0xff]  ;;  %v1424_v32 = vpack.c.bf16 %v373_v23, %v372_v22  ;;  %v342_v34 = vld [vmem:[%s2278_s2 + $0xd0] sm:$0xff] }
  0x33   : > { %509 = vmatmul.mubr.f32.vlgmr.msra.gmra.mrb[0].mxu0 %v1951_v48  ;;  %v325_v30 = vld [vmem:[%s2278_s2 + $0x48] sm:$0xff]  ;;  %v356_v31 = vld [vmem:[%s2278_s2 + $0x140] sm:$0xff]  ;;  %v343_v35 = vld [vmem:[%s2278_s2 + $0xd8] sm:$0xff] }
  0x34   : > { %579 = vmatmul.mubr.f32.vlgmr.msra.gmra.mrb[0].mxu1 %v1954_v49  ;;  %1379 = vmatpush3.bf16.msra.mxu0 %v1378_v50  ;;  %v357_v33 = vld [vmem:[%s2278_s2 + $0x148] sm:$0xff]  ;;  %v374_v36 = vld [vmem:[%s2278_s2 + $0x1d0] sm:$0xff]  ;;  %v375_v37 = vld [vmem:[%s2278_s2 + $0x1d8] sm:$0xff]  ;;  %v1394_v38 = vpack.c.bf16 %v325_v30, %v324_v29  ;;  %v1396_v40 = vpack.c.bf16 %v343_v35, %v342_v34 }
  0x35   : > { %1411 = vmatpush3.bf16.msra.mxu1 %v1410_v51  ;;  %1381 = vmatprep.subr.bf16.mxu0 %v1380_v52  ;;  %v1426_v39 = vpack.c.bf16 %v357_v33, %v356_v31  ;;  %v326_v41 = vld [vmem:[%s2278_s2 + $0x50] sm:$0xff]  ;;  %v327_v42 = vld [vmem:[%s2278_s2 + $0x58] sm:$0xff]  ;;  %v1428_v44 = vpack.c.bf16 %v375_v37, %v374_v36  ;;  %v344_v46 = vld [vmem:[%s2278_s2 + $0xe0] sm:$0xff] }
  0x36   : > { %1413 = vmatprep.subr.bf16.mxu1 %v1412_v56  ;;  %648 = vmatprep.mubr.f32.mxu0 %v2038_v25  ;;  %v358_v43 = vld [vmem:[%s2278_s2 + $0x150] sm:$0xff]  ;;  %v359_v45 = vld [vmem:[%s2278_s2 + $0x158] sm:$0xff]  ;;  %v345_v47 = vld [vmem:[%s2278_s2 + $0xe8] sm:$0xff]  ;;  %v1398_v52 = vpack.c.bf16 %v327_v42, %v326_v41 }
  0x37   : > { %718 = vmatprep.mubr.f32.mxu1 %v2041_v26  ;;  %v376_v50 = vld [vmem:[%s2278_s2 + $0x1e0] sm:$0xff]  ;;  %v377_v51 = vld [vmem:[%s2278_s2 + $0x1e8] sm:$0xff]  ;;  %v1430_v53 = vpack.c.bf16 %v359_v45, %v358_v43  ;;  %v1400_v54 = vpack.c.bf16 %v345_v47, %v344_v46  ;;  %v346_v60 = vld [vmem:[%s2278_s2 + $0xf0] sm:$0xff] }
  0x38   : > { %1383 = vmatpush3.bf16.msra.mxu0 %v1382_v62  ;;  %v328_v55 = vld [vmem:[%s2278_s2 + $0x60] sm:$0xff]  ;;  %v329_v56 = vld [vmem:[%s2278_s2 + $0x68] sm:$0xff]  ;;  %v1432_v58 = vpack.c.bf16 %v377_v51, %v376_v50  ;;  %v347_v61 = vld [vmem:[%s2278_s2 + $0xf8] sm:$0xff] }
  0x39   : > { %1415 = vmatpush3.bf16.msra.mxu1 %v1414_v63  ;;  %1385 = vmatprep.subr.bf16.mxu0 %v1384_v0  ;;  %v360_v57 = vld [vmem:[%s2278_s2 + $0x160] sm:$0xff]  ;;  %v361_v59 = vld [vmem:[%s2278_s2 + $0x168] sm:$0xff]  ;;  %v378_v62 = vld [vmem:[%s2278_s2 + $0x1f0] sm:$0xff]  ;;  %v1402_v0 = vpack.c.bf16 %v329_v56, %v328_v55  ;;  %v1404_v2 = vpack.c.bf16 %v347_v61, %v346_v60 }
  0x3a   : > { %1417 = vmatprep.subr.bf16.mxu1 %v1416_v4  ;;  %v379_v63 = vld [vmem:[%s2278_s2 + $0x1f8] sm:$0xff]  ;;  %v1434_v1 = vpack.c.bf16 %v361_v59, %v360_v57  ;;  %v330_v3 = vld [vmem:[%s2278_s2 + $0x70] sm:$0xff]  ;;  %v824_v37 = vld [vmem:[%s2281_s5 + $0x8] sm:$0xff] }
  0x3b   : > { %v331_v4 = vld [vmem:[%s2278_s2 + $0x78] sm:$0xff]  ;;  %v1436_v5 = vpack.c.bf16 %v379_v63, %v378_v62  ;;  %v362_v6 = vld [vmem:[%s2278_s2 + $0x170] sm:$0xff]  ;;  %v823_v42 = vld [vmem:[%s2281_s5] sm:$0xff] }
  0x3c   : > { %1387 = vmatpush3.bf16.msra.mxu0 %v1386_v10  ;;  %v363_v7 = vld [vmem:[%s2278_s2 + $0x178] sm:$0xff]  ;;  %v1406_v8 = vpack.c.bf16 %v331_v4, %v330_v3  ;;  %v2130_v10 = vld [vmem:[%s2020_s29] sm:$0xff]  ;;  %v825_v46 = vld [vmem:[%s2281_s5 + $0x10] sm:$0xff] }
  0x3d   : > { %1419 = vmatpush3.bf16.msra.mxu1 %v1418_v11  ;;  %1389 = vmatprep.subr.bf16.mxu0 %v1388_v12  ;;  %v1438_v9 = vpack.c.bf16 %v363_v7, %v362_v6  ;;  %v2133_v11 = vld [vmem:[%s2020_s29 + $0x10] sm:$0xff]  ;;  %v725_v12 = vld [vmem:[%s2280_s4] sm:$0xf]  ;;  %s1609_s29 = smov 96   ;;  %v830_v41 = vld [vmem:[%s2281_s5 + $0x38] sm:$0xff] }
  0x3e   : > { %1421 = vmatprep.subr.bf16.mxu1 %v1420_v18  ;;  %v827_v43 = vld [vmem:[%s2281_s5 + $0x20] sm:$0xff]  ;;  %v829_v47 = vld [vmem:[%s2281_s5 + $0x30] sm:$0xff]  ;;  %v832_v50 = vld [vmem:[%s2281_s5 + $0x48] sm:$0xff] }
  0x3f   : > { %v1442_v45 = vpack.c.bf16 %v827_v43, %v823_v42  ;;  %v1450_v51 = vpack.c.bf16 %v829_v47, %v825_v46  ;;  %v831_v57 = vld [vmem:[%s2281_s5 + $0x40] sm:$0xff]  ;;  %v833_v59 = vld [vmem:[%s2281_s5 + $0x50] sm:$0xff] }
  0x40   : > { %1391 = vmatpush3.bf16.msra.mxu0 %v1390_v24  ;;  %v837_v61 = vld [vmem:[%s2281_s5 + $0x70] sm:$0xff] }
  0x41   : > { %1423 = vmatpush3.bf16.msra.mxu1 %v1422_v27  ;;  %1393 = vmatprep.subr.bf16.mxu0 %v1392_v28  ;;  %v1454_v62 = vpack.c.bf16 %v837_v61, %v833_v59 }
  0x42   : > { %1425 = vmatprep.subr.bf16.mxu1 %v1424_v32 }
  0x44   : > { %1395 = vmatpush3.bf16.msra.mxu0 %v1394_v38  ;;  %v828_v38 = vld [vmem:[%s2281_s5 + $0x28] sm:$0xff] }
  0x45   : > { %1427 = vmatpush3.bf16.msra.mxu1 %v1426_v39  ;;  %1397 = vmatprep.subr.bf16.mxu0 %v1396_v40  ;;  %v826_v39 = vld [vmem:[%s2281_s5 + $0x18] sm:$0xff]  ;;  %v1440_v40 = vpack.c.bf16 %v828_v38, %v824_v37 }
  0x46   : > { %1429 = vmatprep.subr.bf16.mxu1 %v1428_v44  ;;  %v1448_v44 = vpack.c.bf16 %v830_v41, %v826_v39 }
  0x48   : > { %1399 = vmatpush3.bf16.msra.mxu0 %v1398_v52  ;;  %v836_v52 = vld [vmem:[%s2281_s5 + $0x68] sm:$0xff] }
  0x49   : > { %1431 = vmatpush3.bf16.msra.mxu1 %v1430_v53  ;;  %1401 = vmatprep.subr.bf16.mxu0 %v1400_v54  ;;  %v834_v53 = vld [vmem:[%s2281_s5 + $0x58] sm:$0xff]  ;;  %v1444_v55 = vpack.c.bf16 %v836_v52, %v832_v50 }
  0x4a   : > { %1433 = vmatprep.subr.bf16.mxu1 %v1432_v58  ;;  %v838_v54 = vld [vmem:[%s2281_s5 + $0x78] sm:$0xff]  ;;  %v835_v58 = vld [vmem:[%s2281_s5 + $0x60] sm:$0xff] }
  0x4b   : > { %v1452_v56 = vpack.c.bf16 %v838_v54, %v834_v53  ;;  %v1446_v60 = vpack.c.bf16 %v835_v58, %v831_v57 }
  0x4c   : > { %1403 = vmatpush3.bf16.msra.mxu0 %v1402_v0 }
  0x4d   : > { %1435 = vmatpush3.bf16.msra.mxu1 %v1434_v1  ;;  %1405 = vmatprep.subr.bf16.mxu0 %v1404_v2 }
  0x4e   : > { %1437 = vmatprep.subr.bf16.mxu1 %v1436_v5 }
  0x50   : > { %1407 = vmatpush3.bf16.msra.mxu0 %v1406_v8 }
  0x51   : > { %1439 = vmatpush3.bf16.msra.mxu1 %v1438_v9  ;;  %1307 = vmatprep.subr.mxu0 %v1607_v13 }
  0x52   : > { %1441 = vmatprep.subr.bf16.mxu1 %v1440_v40 }
  0x53   : > { %649 = vmatmul.mubr.f32.vlgmr.msra.gmra.mrb[2].mxu0 %v2130_v10 }
  0x54   : > { %719 = vmatmul.mubr.f32.vlgmr.msra.gmra.mrb[2].mxu1 %v2133_v11  ;;  %1309 = vmatprep.mubr.msk.f32.mxu0 %vm1608_vm1, %v1607_v13 }
  0x55   : > { %1308 = vmatpush3.msk.msra.mxu0 %vm730_vm0, %v725_v12  ;;  %907 = vmatprep.mubr.f32.mxu1 %v1607_v13 }
  0x56   : > { %1449 = vmatprep.subr.bf16.mxu0 %v1448_v44  ;;  %1443 = vmatpush1.bf16.msra.mxu1 %v1442_v45 }
  0x57   : > { %1445 = vmatprep.subr.bf16.mxu1 %v1444_v55 }
  0x5a   : > { %1447 = vmatpush1.bf16.msra.mxu1 %v1446_v60 }
 0x106   : > { %v1197_v14 = vpop.f32.mrb[0].mxu0 }
 0x107   : > { %v1232_v15 = vpop.f32.mrb[0].mxu1  ;;  %v1198_v18 = vpop.f32.mrb[1].mxu0 }
 0x108   : > { %v1199_v19 = vadd.f32 %v1198_v18, %v1197_v14  ;;  %v1233_v20 = vpop.f32.mrb[1].mxu1 }
 0x109   : > { %v1234_v21 = vadd.f32 %v1233_v20, %v1232_v15 }
 0x10b   : > { %v581_v22 = vadd.f32 %v1234_v21, %v1199_v19 }
 0x126   : > { %v1267_v23 = vpop.f32.mrb[2].mxu0 }
 0x127   : > { %v1268_v24 = vpop.f32.mrb[3].mxu0  ;;  %v1302_v27 = vpop.f32.mrb[2].mxu1 }
 0x128   : > { %v1269_v28 = vadd.f32 %v1268_v24, %v1267_v23  ;;  %v1303_v29 = vpop.f32.mrb[3].mxu1 }
 0x129   : > { %v1304_v30 = vadd.f32 %v1303_v29, %v1302_v27 }
 0x12a   : > { %v651_v31 = vadd.f32 %v1269_v28, %v581_v22 }
 0x12c   : > { %v721_v32 = vadd.f32 %v1304_v30, %v651_v31 }
 0x12e   : > { %1503 = vtanh.f32 %v721_v32 }
 0x138   : > { %v1504_v33 = vpop.eup %1503 }
 0x139   : > { %1310 = vmatmul.mubr.msk.f32.vlgmr.msra.gmra.mrb[4].mxu0 %vm726_vm2, %v1504_v33 }
 0x13a   : > { %978 = vmatprep.mubr.f32.mxu0 %v1607_v13  ;;  %1451 = vmatpush1.bf16.msra.mxu0 %v1450_v51 }
 0x13b   : > { %1453 = vmatprep.subr.bf16.mxu0 %v1452_v56 }
 0x13e   : > { %1455 = vmatpush1.bf16.msra.mxu0 %v1454_v62 }
 0x20c   : > { %v800_v34 = vpop.f32.mrb[4].mxu0 }
 0x20d   : > { %v804_v35 = vmul.f32 %v800_v34, %v800_v34  ;;  %v1311_v36 = vpop.f32.mrb[5].mxu0 }
 0x20f   : > { %806 = vrot.lane.b32.xlu0 %v804_v35, %s1609_s29 }
 0x281   : > { %v807_v63 = vpop.permute.xlu0 %806 }
 0x282   : > { %v809_v0 = vadd.f32 %v807_v63, %v804_v35 }
 0x284   : > { %1505 = vrsqrt.f32 %v809_v0  ;;  %vm812_vm3 = vcmp.eq.f32.partialorder %v809_v0, inf  ;;  %v815_v3 = vand.u32 2147483648, %v809_v0  ;;  %vm814_vm4 = vcmp.eq.f32.partialorder %v809_v0, 0.0 }
 0x28e   : > { %v1506_v1 = vpop.eup %1505 }
 0x28f   : > { %v811_v2 = vmul.f32 %v1506_v1, %v809_v0 }
 0x291   : > { %v813_v4 = vsel %vm812_vm3, %v809_v0, %v811_v2 }
 0x292   : > { %v816_v5 = vsel %vm814_vm4, %v815_v3, %v813_v4 }
 0x293   : > { %v1150_v6 = vmul.f32 -1.442695, %v816_v5 }
 0x295   : > { %1507 = vpow2.f32 %v1150_v6 }
 0x29f   : > { %v1508_v7 = vpop.eup %1507 }
 0x2a0   : > { %v820_v8 = vadd.f32 1.0, %v1508_v7 }
 0x2a2   : > { %1509 = vrcp.f32 %v820_v8 }
 0x2ac   : > { %v1510_v9 = vpop.eup %1509 }
 0x2ad   : > { %1151 = vmatmul.mubr.msk.f32.vlgmr.msra.gmra.mrb[4].mxu1 %vm839_vm5, %v1510_v9  ;;  %1152 = vmatmul.mubr.msk.f32.vlgmr.msra.gmra.mrb[6].mxu0 %vm839_vm5, %v1510_v9 }
 0x380   : > { %v909_v12 = vpop.f32.mrb[4].mxu1  ;;  %v980_v13 = vpop.f32.mrb[6].mxu0 }
 0x381   : > { %v985_v14 = vmul.f32 %v909_v12, %v2130_v10  ;;  %v993_v15 = vmul.f32 %v909_v12, %v1951_v48  ;;  %v987_v18 = vmul.f32 %v980_v13, %v2133_v11  ;;  %v995_v19 = vmul.f32 %v980_v13, %v1954_v49  ;;  %v911_v20 = vpop.f32.mrb[5].mxu1  ;;  %v982_v21 = vpop.f32.mrb[7].mxu0 }
 0x382   : > { %v986_v22 = vmul.f32 %v911_v20, %v2038_v25  ;;  %v994_v23 = vmul.f32 %v911_v20, %v1880_v16  ;;  %v988_v10 = vmul.f32 %v982_v21, %v2041_v26  ;;  %v996_v48 = vmul.f32 %v982_v21, %v1883_v17 }
 0x383   : > { %989 = vst [vmem:[%s290_s20] sm:$0xff] %v985_v14  ;;  %997 = vst [vmem:[%s297_s23] sm:$0xff] %v993_v15 }
 0x384   : > { %991 = vst [vmem:[%s290_s20 + $0x10] sm:$0xff] %v987_v18  ;;  %999 = vst [vmem:[%s297_s23 + $0x10] sm:$0xff] %v995_v19 }
 0x385   : > { %990 = vst [vmem:[%s290_s20 + $0x8] sm:$0xff] %v986_v22  ;;  %998 = vst [vmem:[%s297_s23 + $0x8] sm:$0xff] %v994_v23 }
 0x386   : > { %992 = vst [vmem:[%s290_s20 + $0x18] sm:$0xff] %v988_v10  ;;  %1000 = vst [vmem:[%s297_s23 + $0x18] sm:$0xff] %v996_v48 }
 0x387   : > { %1524 = shalt.err (!%p1521_p3)
}
 0x388   : > { %s1525_s18 = scalar_lea.hbm %s2200_s28, 512  ;;  %s1529_s29 = scalar_lea.hbm %s2282_s6, 1024 }
 0x389   : > { %p1526_p4 = scmp.ne.s32.totalorder %s2200_s28, %s1525_s18  ;;  %p1530_p9 = scmp.lt.u32.totalorder %s2200_s28, %s2282_s6 }
 0x38a   : > { %p1531_p10 = scmp.lt.u32.totalorder %s1529_s29, %s1525_s18  ;;  %p1533_p12 = scmp.lt.u32.totalorder %s1525_s18, %s2200_s28 }
 0x38b   : > { %p1527_p7 = pnand %p1526_p4, %p1690_p5 }
 0x38c   : > { %p1532_p11 = por %p1531_p10, %p1530_p9 }
 0x38d   : > { %p1528_p8 = pneg %p1527_p7 }
 0x38e   : > { %p1534_p13 = por %p1533_p12, %p1532_p11 }
 0x390   : > { %p1535_p0 = pnand %p1534_p13, %p1528_p8 }
 0x392   : > { %1538 = shalt.err (!%p1535_p0)
}
 0x393   : > { %1456 = dma.vmem_to_hbm [thread:$0]  (%p1690_p5), %s2206_s21, 512, %s2200_s28, %s1002_s16  }
 0x394   : > { %s1007_s15 = scalar_lea.sflag [#allocation5], %s2189_s17  ;;  %s1539_s22 = scalar_lea.vmem %s2213_s8, 512 }
 0x395   : > { %p1540_p1 = scmp.ne.s32.totalorder %s2213_s8, %s1539_s22  ;;  %s1611_s9 = smov [#allocation4]  }
 0x396   : > { %s1543_s18 = sshll.u32 %s1611_s9, 4  ;;  %s1544_s18 = int_to_ptr.vmem [resolvable:$false] %s1543_s18 }
 0x397   : > { %p1541_p2 = pnand %p1540_p1, %p1690_p5  ;;  %s1545_s20 = scalar_lea.vmem %s1544_s18, 1024 }
 0x398   : > { %p1546_p4 = scmp.lt.s32.totalorder %s2213_s8, %s1544_s18  ;;  %p1547_p7 = scmp.lt.s32.totalorder %s1545_s20, %s1539_s22 }
 0x399   : > { %p1542_p3 = pneg %p1541_p2 }
 0x39a   : > { %p1548_p8 = por %p1547_p7, %p1546_p4 }
 0x39c   : > { %p1549_p9 = pnand %p1548_p8, %p1542_p3 }
 0x39e   : > { %1552 = shalt.err (!%p1549_p9)
}
 0x39f   : > { %s1553_s17 = scalar_lea.hbm %s2211_s14, 512  ;;  %s1557_s16 = scalar_lea.hbm %s2283_s7, 1024 }
 0x3a0   : > { %p1554_p10 = scmp.ne.s32.totalorder %s2211_s14, %s1553_s17  ;;  %p1558_p13 = scmp.lt.u32.totalorder %s2211_s14, %s2283_s7 }
 0x3a1   : > { %p1559_p0 = scmp.lt.u32.totalorder %s1557_s16, %s1553_s17  ;;  %p1561_p2 = scmp.lt.u32.totalorder %s1553_s17, %s2211_s14 }
 0x3a2   : > { %p1555_p11 = pnand %p1554_p10, %p1690_p5 }
 0x3a3   : > { %p1560_p1 = por %p1559_p0, %p1558_p13 }
 0x3a4   : > { %p1556_p12 = pneg %p1555_p11 }
 0x3a5   : > { %p1562_p3 = por %p1561_p2, %p1560_p1 }
 0x3a7   : > { %p1563_p4 = pnand %p1562_p3, %p1556_p12 }
 0x3a9   : > { %1566 = shalt.err (!%p1563_p4)
}
 0x3aa   : > { %1457 = dma.vmem_to_hbm [thread:$0]  (%p1690_p5), %s2213_s8, 512, %s2211_s14, %s1007_s15  }
 0x3ab PF: > { %p1467_p7 = scmp.ge.s32.totalorder %s1605_s27, 2  ;;  %s1047_s13 = sand.u32 1, %s1593_s24  }
 0x3ac   : > { %s1048_s19 = scalar_lea.sflag [#allocation3], %s1047_s13 }
 0x3ad   : > { %p1461_p8 = pnand %p1467_p7, %p1694_p6 }
 0x3af   : > { %1584 = dma.done.wait (!%p1461_p8), %s1048_s19, 512  }
 0x3b0   : > { %1586 = vsyncadd (!%p1461_p8), %s1048_s19, 4294966784  ;;  %s1057_s22 = scalar_lea.sflag [#allocation5], %s1047_s13 }
 0x3b1   : > { %1588 = dma.done.wait (!%p1461_p8), %s1057_s22, 512  }
 0x3b2   : > { %1590 = vsyncadd (!%p1461_p8), %s1057_s22, 4294966784  ;;  %p21_p5 = scmp.ge.s32.totalorder %s1677_s30, 4   ;;  %s2286_s24 = smov %s1597_s25 }
 0x3b3   : > { %s2287_s25 = smov %s1601_s26  ;;  %s2288_s26 = smov %s1688_s10 }
 0x3b4   : > { %s2289_s27 = smov %s1677_s30  ;;  %23 = sbr.rel (!%p21_p5) target bundleno = 5 (0x5), region = 99 }
 0x3bb   :  { %1062 = vsyncpa [#allocation3], 1 }
 0x3bc   :  { %1064 = vsyncpa [#allocation3 + $0x1], 1 }
 0x3bd   :  { %1065 = vsyncpa [#allocation5], 1 }
 0x3be   :  { %1067 = vsyncpa [#allocation5 + $0x1], 1 }

</bundles_post_ra>
